<compile_context>
chip_gen: v5e
topology: v5e:2x2
jax: 0.10.0
libtpu: 0.0.40
codegen_flags: <defaults>
</compile_context>

<pallas_src>
import jax
import jax.numpy as jnp
from jax.experimental import pallas as pl
from jax.experimental.pallas import tpu as pltpu


def _ego_rnn_kernel(x_ref, wadd_ref, badd_ref, wblk_ref, wout_ref, bout_ref,
                    out_ref):
    """Full forward in one invocation (recurrence fully unrolled, state in vregs).

    x_ref:    (B*T, D) f32   flattened frames, row order (b, t)
    wadd_ref: (D, 8H)  f32   layer-0 input projection, gate-interleaved cols
                             [i0 i1 f0 f1 g0 g1 o0 o1] (layer-1 blocks = 0)
    badd_ref: (1, 8H)  f32   summed biases of both layers, gate-interleaved
    wblk_ref: (2H, 8H) bf16  skewed block weight [[Whh0^T, Wih1^T],[0, Whh1^T]]
    wout_ref: (H, 6)   f32   fused linear1 @ linear2 weight
    bout_ref: (1, 6)   f32   fused output bias
    out_ref:  (B, 6)   f32
    """
    f32 = jnp.float32
    bf16 = jnp.bfloat16

    B = out_ref.shape[0]
    T = x_ref.shape[0] // B
    H2 = wblk_ref.shape[0]          # 2H
    H = H2 // 2
    H8 = wblk_ref.shape[1]          # 8H

    wblk = wblk_ref[...]            # (2H, 8H) bf16, resident for the whole loop

    # ---- Prologue (off the serial chain): fused input projection for all T
    # steps of both-layer additive gate terms, biases folded in once.
    add = jnp.dot(x_ref[...], wadd_ref[...], preferred_element_type=f32)
    add = add.reshape(B, T, H8) + badd_ref[...]          # (B, T, 8H)

    def gate_update(pre, c_prev):
        # pre: (B, 8H) interleaved pre-activations for BOTH layers.
        # Two full-width transcendentals instead of eight sliced ones.
        sg = jax.nn.sigmoid(pre)
        th = jnp.tanh(pre)
        i_p = sg[:, 0 * H2:1 * H2]
        f_p = sg[:, 1 * H2:2 * H2]
        g_p = th[:, 2 * H2:3 * H2]
        o_p = sg[:, 3 * H2:4 * H2]
        c_new = f_p * c_prev + i_p * g_p                 # (B, 2H) = [c0 | c1]
        h_new = o_p * jnp.tanh(c_new)                    # (B, 2H) = [h0 | h1]
        return h_new, c_new

    # ---- Init: layer-0 step 0 (h0(-1)=c0(-1)=0 => gates come purely from the
    # projected input); layer-1 lanes are masked to keep h1(-1)=c1(-1)=0.
    mask_l0 = (jax.lax.broadcasted_iota(jnp.int32, (B, H2), 1) < H).astype(f32)
    a0 = add[:, 0, :]
    sg0 = jax.nn.sigmoid(a0)
    th0 = jnp.tanh(a0)
    c_state = (sg0[:, 0:H2] * th0[:, 2 * H2:3 * H2]) * mask_l0   # [c0(0) | 0]
    h_state = sg0[:, 3 * H2:4 * H2] * jnp.tanh(c_state)          # [h0(0) | 0]

    # ---- Skewed recurrence: at step t the single fused matmul produces
    # layer-1 gates for step t (right half) and layer-0 gates for step t+1
    # (left half).  State stays pre-concatenated as one (B, 2H) slab.
    b_last = jnp.broadcast_to(badd_ref[...], (B, H8))    # hoisted, used once
    for t in range(T):
        a_t = add[:, t + 1, :] if t + 1 < T else b_last
        m = jnp.dot(h_state.astype(bf16), wblk,
                    preferred_element_type=f32) + a_t
        h_state, c_state = gate_update(m, c_state)
        # After this: h_state = [h0(t+1) | h1(t)], c_state = [c0(t+1) | c1(t)]
        # (layer-0 lanes at the final step are unused scratch).

    # ---- Epilogue: h1(T-1) sits in lanes [H:2H); fused linear1->linear2.
    y = jnp.dot(h_state[:, H:H2], wout_ref[...], preferred_element_type=f32)
    out_ref[...] = (y + bout_ref[...]).astype(out_ref.dtype)


@jax.jit
def ego_rnn_forward(seqs, kparams):
    """seqs: (B, T, C, H, W) float32, mirroring the PyTorch module input."""
    B, T = seqs.shape[0], seqs.shape[1]
    D = seqs.shape[2] * seqs.shape[3] * seqs.shape[4]

    # Free contiguous reshape only; projection + transpose-free time indexing
    # happen inside the kernel.
    x = seqs.reshape(B * T, D).astype(jnp.float32)

    return pl.pallas_call(
        _ego_rnn_kernel,
        out_shape=jax.ShapeDtypeStruct((B, 6), jnp.float32),
        in_specs=[pl.BlockSpec(memory_space=pltpu.MemorySpace.VMEM)] * 6,
        out_specs=pl.BlockSpec(memory_space=pltpu.MemorySpace.VMEM),
    )(x, kparams["wadd"], kparams["badd"], kparams["wblk"],
      kparams["wout"], kparams["bout"])


def make_params(key, input_dim, hidden_dim, linear_dim):
    """PyTorch-layout synthetic parameters (uniform init like nn.LSTM/Linear)."""
    ks = jax.random.split(key, 12)
    s = 1.0 / float(hidden_dim) ** 0.5
    s2 = 1.0 / float(linear_dim) ** 0.5
    u = lambda k, shape, scale: jax.random.uniform(
        k, shape, jnp.float32, -scale, scale)
    return dict(
        w_ih0=u(ks[0], (4 * hidden_dim, input_dim), s),
        w_hh0=u(ks[1], (4 * hidden_dim, hidden_dim), s),
        b_ih0=u(ks[2], (4 * hidden_dim,), s),
        b_hh0=u(ks[3], (4 * hidden_dim,), s),
        w_ih1=u(ks[4], (4 * hidden_dim, hidden_dim), s),
        w_hh1=u(ks[5], (4 * hidden_dim, hidden_dim), s),
        b_ih1=u(ks[6], (4 * hidden_dim,), s),
        b_hh1=u(ks[7], (4 * hidden_dim,), s),
        w_l1=u(ks[8], (linear_dim, hidden_dim), s),
        b_l1=u(ks[9], (linear_dim,), s),
        w_l2=u(ks[10], (6, linear_dim), s2),
        b_l2=u(ks[11], (6,), s2),
    )


def prepare_params(p):
    """One-time repack of PyTorch-layout weights into the kernel layout."""
    hi = jax.lax.Precision.HIGHEST
    H = p["w_hh0"].shape[1]
    D = p["w_ih0"].shape[1]

    def interleave(a0, a1):
        # a0/a1: (..., 4H) in PyTorch gate order (i, f, g, o) for layer 0 / 1.
        # Returns (..., 8H) in the kernel layout [i0 i1 f0 f1 g0 g1 o0 o1].
        blocks = []
        for k in range(4):
            blocks.append(a0[..., k * H:(k + 1) * H])
            blocks.append(a1[..., k * H:(k + 1) * H])
        return jnp.concatenate(blocks, axis=-1)

    z_d = jnp.zeros((D, 4 * H), jnp.float32)
    z_h = jnp.zeros((H, 4 * H), jnp.float32)

    # Input projection (layer-1 blocks are zero: x never feeds layer 1 directly).
    wadd = interleave(p["w_ih0"].T, z_d)                              # (D, 8H)
    # Summed biases of both layers in the interleaved layout.
    badd = interleave((p["b_ih0"] + p["b_hh0"])[None, :],
                      (p["b_ih1"] + p["b_hh1"])[None, :])             # (1, 8H)
    # Skewed block recurrent weight: [h0(t), h1(t-1)] @ wblk gives
    # layer-0 recurrent gates for t+1 and layer-1 gates for t in one push.
    wblk = jnp.concatenate(
        [interleave(p["w_hh0"].T, p["w_ih1"].T),                      # rows for h0
         interleave(z_h, p["w_hh1"].T)],                              # rows for h1
        axis=0).astype(jnp.bfloat16)                                  # (2H, 8H)

    wl1_t = p["w_l1"].T                                               # (H, linear_dim)
    wl2_t = p["w_l2"].T                                               # (linear_dim, 6)
    return dict(
        wadd=wadd,
        badd=badd,
        wblk=wblk,
        # No activation between linear1 and linear2 in the module -> fuse.
        wout=jnp.dot(wl1_t, wl2_t, precision=hi),                     # (H, 6)
        bout=(jnp.dot(p["b_l1"], wl2_t, precision=hi) + p["b_l2"])[None, :],
    )


def ego_rnn_reference(seqs, p):
    """Pure-JAX reference of the PyTorch forward (unfused weights)."""
    B, T = seqs.shape[0], seqs.shape[1]
    D = seqs.shape[2] * seqs.shape[3] * seqs.shape[4]
    H = p["w_hh0"].shape[1]
    x = jnp.transpose(seqs, (1, 0, 2, 3, 4)).reshape(T, B, D).astype(jnp.float32)

    def cell(x_t, h, c, w_ih, w_hh, b_ih, b_hh):
        gates = x_t @ w_ih.T + b_ih + h @ w_hh.T + b_hh
        i = jax.nn.sigmoid(gates[:, 0 * H:1 * H])
        f = jax.nn.sigmoid(gates[:, 1 * H:2 * H])
        g = jnp.tanh(gates[:, 2 * H:3 * H])
        o = jax.nn.sigmoid(gates[:, 3 * H:4 * H])
        c = f * c + i * g
        h = o * jnp.tanh(c)
        return h, c

    h0 = c0 = h1 = c1 = jnp.zeros((B, H), jnp.float32)
    for t in range(T):
        h0, c0 = cell(x[t], h0, c0, p["w_ih0"], p["w_hh0"],
                      p["b_ih0"], p["b_hh0"])
        h1, c1 = cell(h0, h1, c1, p["w_ih1"], p["w_hh1"],
                      p["b_ih1"], p["b_hh1"])
    y = h1 @ p["w_l1"].T + p["b_l1"]
    y = y @ p["w_l2"].T + p["b_l2"]
    return y


if __name__ == "__main__":
    # Small shapes consistent with the module:
    #   batch=2, seq=8, channels=4, spatial=4x4 -> input_dim = 64
    B, T, C, Hs, Ws = 2, 8, 4, 4, 4
    input_dim = C * Hs * Ws        # 64
    hidden_dim = 32
    linear_dim = 128

    key = jax.random.PRNGKey(0)
    k_in, k_par = jax.random.split(key)
    seqs = jax.random.normal(k_in, (B, T, C, Hs, Ws), jnp.float32)

    params = make_params(k_par, input_dim, hidden_dim, linear_dim)
    kparams = prepare_params(params)

    out = jax.block_until_ready(ego_rnn_forward(seqs, kparams))
    ref = ego_rnn_reference(seqs, params)

    assert out.shape == (B, 6)
    # Tolerance accounts for bf16 recurrent-matmul operands (f32 accumulate)
    # over T=8 steps plus the offline linear1@linear2 fusion rounding.
    assert jnp.allclose(out, ref, atol=5e-3, rtol=5e-3), (out, ref)
    print("KERNEL_OK")
</pallas_src>

<mosaic_0001>
module attributes {stable_mosaic.version = 11 : i64} {
  func.func @_ego_rnn_kernel(%arg0: memref<16x64xf32, #tpu.memory_space<vmem>>, %arg1: memref<64x256xf32, #tpu.memory_space<vmem>>, %arg2: memref<1x256xf32, #tpu.memory_space<vmem>>, %arg3: memref<64x256xbf16, #tpu.memory_space<vmem>>, %arg4: memref<32x6xf32, #tpu.memory_space<vmem>>, %arg5: memref<1x6xf32, #tpu.memory_space<vmem>>, %arg6: memref<2x6xf32, #tpu.memory_space<vmem>>) attributes {dimension_semantics = [], scalar_prefetch = 0 : i64, scratch_operands = 0 : i64, tpu.core_type = #tpu.core_type<tc>} {
    %c0 = arith.constant 0 : index
    %c0_0 = arith.constant 0 : index
    %0 = vector.load %arg3[%c0, %c0_0] : memref<64x256xbf16, #tpu.memory_space<vmem>>, vector<64x256xbf16>
    %c0_1 = arith.constant 0 : index
    %c0_2 = arith.constant 0 : index
    %1 = vector.load %arg0[%c0_1, %c0_2] : memref<16x64xf32, #tpu.memory_space<vmem>>, vector<16x64xf32>
    %c0_3 = arith.constant 0 : index
    %c0_4 = arith.constant 0 : index
    %2 = vector.load %arg1[%c0_3, %c0_4] : memref<64x256xf32, #tpu.memory_space<vmem>>, vector<64x256xf32>
    %cst = arith.constant dense<0.000000e+00> : vector<16x256xf32>
    %3 = tpu.matmul %1, %2, %cst {dimension_numbers = #tpu.dot_dimension_numbers<[1], [0], [0], [1], [0, 0, 1, 1], [], []>} : vector<16x64xf32>, vector<64x256xf32>, vector<16x256xf32> -> vector<16x256xf32>
    %4 = vector.shape_cast %3 : vector<16x256xf32> to vector<2x8x256xf32>
    %c0_5 = arith.constant 0 : index
    %c0_6 = arith.constant 0 : index
    %5 = vector.load %arg2[%c0_5, %c0_6] : memref<1x256xf32, #tpu.memory_space<vmem>>, vector<1x256xf32>
    %6 = vector.shape_cast %5 : vector<1x256xf32> to vector<1x1x256xf32>
    %7 = vector.broadcast %6 : vector<1x1x256xf32> to vector<2x8x256xf32>
    %8 = arith.addf %4, %7 : vector<2x8x256xf32>
    %9 = tpu.iota {dimensions = array<i32: 1>} : vector<2x64xi32>
    %c32_i32 = arith.constant 32 : i32
    %10 = vector.broadcast %c32_i32 : i32 to vector<2x64xi32>
    %11 = arith.cmpi slt, %9, %10 : vector<2x64xi32>
    %12 = arith.extui %11 : vector<2x64xi1> to vector<2x64xi32>
    %13 = arith.sitofp %12 : vector<2x64xi32> to vector<2x64xf32>
    %14 = vector.extract_strided_slice %8 {offsets = [0, 0, 0], sizes = [2, 1, 256], strides = [1, 1, 1]} : vector<2x8x256xf32> to vector<2x1x256xf32>
    %15 = vector.shape_cast %14 : vector<2x1x256xf32> to vector<2x256xf32>
    %16 = arith.negf %15 : vector<2x256xf32>
    %17 = math.exp %16 : vector<2x256xf32>
    %cst_7 = arith.constant 1.000000e+00 : f32
    %18 = vector.broadcast %cst_7 : f32 to vector<2x256xf32>
    %19 = arith.addf %18, %17 : vector<2x256xf32>
    %20 = arith.divf %18, %19 : vector<2x256xf32>
    %21 = math.tanh %15 : vector<2x256xf32>
    %22 = vector.extract_strided_slice %20 {offsets = [0, 0], sizes = [2, 64], strides = [1, 1]} : vector<2x256xf32> to vector<2x64xf32>
    %23 = vector.extract_strided_slice %21 {offsets = [0, 128], sizes = [2, 64], strides = [1, 1]} : vector<2x256xf32> to vector<2x64xf32>
    %24 = arith.mulf %22, %23 : vector<2x64xf32>
    %25 = arith.mulf %24, %13 : vector<2x64xf32>
    %26 = vector.extract_strided_slice %20 {offsets = [0, 192], sizes = [2, 64], strides = [1, 1]} : vector<2x256xf32> to vector<2x64xf32>
    %27 = math.tanh %25 : vector<2x64xf32>
    %28 = arith.mulf %26, %27 : vector<2x64xf32>
    %c0_8 = arith.constant 0 : index
    %c0_9 = arith.constant 0 : index
    %29 = vector.load %arg2[%c0_8, %c0_9] : memref<1x256xf32, #tpu.memory_space<vmem>>, vector<1x256xf32>
    %30 = vector.shape_cast %29 : vector<1x256xf32> to vector<1x256xf32>
    %31 = vector.broadcast %30 : vector<1x256xf32> to vector<2x256xf32>
    %32 = vector.extract_strided_slice %8 {offsets = [0, 1, 0], sizes = [2, 1, 256], strides = [1, 1, 1]} : vector<2x8x256xf32> to vector<2x1x256xf32>
    %33 = vector.shape_cast %32 : vector<2x1x256xf32> to vector<2x256xf32>
    %34 = arith.truncf %28 : vector<2x64xf32> to vector<2x64xbf16>
    %cst_10 = arith.constant dense<0.000000e+00> : vector<2x256xf32>
    %35 = tpu.matmul %34, %0, %cst_10 {dimension_numbers = #tpu.dot_dimension_numbers<[1], [0], [0], [1], [0, 0, 1, 1], [], []>} : vector<2x64xbf16>, vector<64x256xbf16>, vector<2x256xf32> -> vector<2x256xf32>
    %36 = arith.addf %35, %33 : vector<2x256xf32>
    %37 = arith.negf %36 : vector<2x256xf32>
    %38 = math.exp %37 : vector<2x256xf32>
    %cst_11 = arith.constant 1.000000e+00 : f32
    %39 = vector.broadcast %cst_11 : f32 to vector<2x256xf32>
    %40 = arith.addf %39, %38 : vector<2x256xf32>
    %41 = arith.divf %39, %40 : vector<2x256xf32>
    %42 = math.tanh %36 : vector<2x256xf32>
    %43 = vector.extract_strided_slice %41 {offsets = [0, 0], sizes = [2, 64], strides = [1, 1]} : vector<2x256xf32> to vector<2x64xf32>
    %44 = vector.extract_strided_slice %41 {offsets = [0, 64], sizes = [2, 64], strides = [1, 1]} : vector<2x256xf32> to vector<2x64xf32>
    %45 = vector.extract_strided_slice %42 {offsets = [0, 128], sizes = [2, 64], strides = [1, 1]} : vector<2x256xf32> to vector<2x64xf32>
    %46 = vector.extract_strided_slice %41 {offsets = [0, 192], sizes = [2, 64], strides = [1, 1]} : vector<2x256xf32> to vector<2x64xf32>
    %47 = arith.mulf %44, %25 : vector<2x64xf32>
    %48 = arith.mulf %43, %45 : vector<2x64xf32>
    %49 = arith.addf %47, %48 : vector<2x64xf32>
    %50 = math.tanh %49 : vector<2x64xf32>
    %51 = arith.mulf %46, %50 : vector<2x64xf32>
    %52 = vector.extract_strided_slice %8 {offsets = [0, 2, 0], sizes = [2, 1, 256], strides = [1, 1, 1]} : vector<2x8x256xf32> to vector<2x1x256xf32>
    %53 = vector.shape_cast %52 : vector<2x1x256xf32> to vector<2x256xf32>
    %54 = arith.truncf %51 : vector<2x64xf32> to vector<2x64xbf16>
    %cst_12 = arith.constant dense<0.000000e+00> : vector<2x256xf32>
    %55 = tpu.matmul %54, %0, %cst_12 {dimension_numbers = #tpu.dot_dimension_numbers<[1], [0], [0], [1], [0, 0, 1, 1], [], []>} : vector<2x64xbf16>, vector<64x256xbf16>, vector<2x256xf32> -> vector<2x256xf32>
    %56 = arith.addf %55, %53 : vector<2x256xf32>
    %57 = arith.negf %56 : vector<2x256xf32>
    %58 = math.exp %57 : vector<2x256xf32>
    %cst_13 = arith.constant 1.000000e+00 : f32
    %59 = vector.broadcast %cst_13 : f32 to vector<2x256xf32>
    %60 = arith.addf %59, %58 : vector<2x256xf32>
    %61 = arith.divf %59, %60 : vector<2x256xf32>
    %62 = math.tanh %56 : vector<2x256xf32>
    %63 = vector.extract_strided_slice %61 {offsets = [0, 0], sizes = [2, 64], strides = [1, 1]} : vector<2x256xf32> to vector<2x64xf32>
    %64 = vector.extract_strided_slice %61 {offsets = [0, 64], sizes = [2, 64], strides = [1, 1]} : vector<2x256xf32> to vector<2x64xf32>
    %65 = vector.extract_strided_slice %62 {offsets = [0, 128], sizes = [2, 64], strides = [1, 1]} : vector<2x256xf32> to vector<2x64xf32>
    %66 = vector.extract_strided_slice %61 {offsets = [0, 192], sizes = [2, 64], strides = [1, 1]} : vector<2x256xf32> to vector<2x64xf32>
    %67 = arith.mulf %64, %49 : vector<2x64xf32>
    %68 = arith.mulf %63, %65 : vector<2x64xf32>
    %69 = arith.addf %67, %68 : vector<2x64xf32>
    %70 = math.tanh %69 : vector<2x64xf32>
    %71 = arith.mulf %66, %70 : vector<2x64xf32>
    %72 = vector.extract_strided_slice %8 {offsets = [0, 3, 0], sizes = [2, 1, 256], strides = [1, 1, 1]} : vector<2x8x256xf32> to vector<2x1x256xf32>
    %73 = vector.shape_cast %72 : vector<2x1x256xf32> to vector<2x256xf32>
    %74 = arith.truncf %71 : vector<2x64xf32> to vector<2x64xbf16>
    %cst_14 = arith.constant dense<0.000000e+00> : vector<2x256xf32>
    %75 = tpu.matmul %74, %0, %cst_14 {dimension_numbers = #tpu.dot_dimension_numbers<[1], [0], [0], [1], [0, 0, 1, 1], [], []>} : vector<2x64xbf16>, vector<64x256xbf16>, vector<2x256xf32> -> vector<2x256xf32>
    %76 = arith.addf %75, %73 : vector<2x256xf32>
    %77 = arith.negf %76 : vector<2x256xf32>
    %78 = math.exp %77 : vector<2x256xf32>
    %cst_15 = arith.constant 1.000000e+00 : f32
    %79 = vector.broadcast %cst_15 : f32 to vector<2x256xf32>
    %80 = arith.addf %79, %78 : vector<2x256xf32>
    %81 = arith.divf %79, %80 : vector<2x256xf32>
    %82 = math.tanh %76 : vector<2x256xf32>
    %83 = vector.extract_strided_slice %81 {offsets = [0, 0], sizes = [2, 64], strides = [1, 1]} : vector<2x256xf32> to vector<2x64xf32>
    %84 = vector.extract_strided_slice %81 {offsets = [0, 64], sizes = [2, 64], strides = [1, 1]} : vector<2x256xf32> to vector<2x64xf32>
    %85 = vector.extract_strided_slice %82 {offsets = [0, 128], sizes = [2, 64], strides = [1, 1]} : vector<2x256xf32> to vector<2x64xf32>
    %86 = vector.extract_strided_slice %81 {offsets = [0, 192], sizes = [2, 64], strides = [1, 1]} : vector<2x256xf32> to vector<2x64xf32>
    %87 = arith.mulf %84, %69 : vector<2x64xf32>
    %88 = arith.mulf %83, %85 : vector<2x64xf32>
    %89 = arith.addf %87, %88 : vector<2x64xf32>
    %90 = math.tanh %89 : vector<2x64xf32>
    %91 = arith.mulf %86, %90 : vector<2x64xf32>
    %92 = vector.extract_strided_slice %8 {offsets = [0, 4, 0], sizes = [2, 1, 256], strides = [1, 1, 1]} : vector<2x8x256xf32> to vector<2x1x256xf32>
    %93 = vector.shape_cast %92 : vector<2x1x256xf32> to vector<2x256xf32>
    %94 = arith.truncf %91 : vector<2x64xf32> to vector<2x64xbf16>
    %cst_16 = arith.constant dense<0.000000e+00> : vector<2x256xf32>
    %95 = tpu.matmul %94, %0, %cst_16 {dimension_numbers = #tpu.dot_dimension_numbers<[1], [0], [0], [1], [0, 0, 1, 1], [], []>} : vector<2x64xbf16>, vector<64x256xbf16>, vector<2x256xf32> -> vector<2x256xf32>
    %96 = arith.addf %95, %93 : vector<2x256xf32>
    %97 = arith.negf %96 : vector<2x256xf32>
    %98 = math.exp %97 : vector<2x256xf32>
    %cst_17 = arith.constant 1.000000e+00 : f32
    %99 = vector.broadcast %cst_17 : f32 to vector<2x256xf32>
    %100 = arith.addf %99, %98 : vector<2x256xf32>
    %101 = arith.divf %99, %100 : vector<2x256xf32>
    %102 = math.tanh %96 : vector<2x256xf32>
    %103 = vector.extract_strided_slice %101 {offsets = [0, 0], sizes = [2, 64], strides = [1, 1]} : vector<2x256xf32> to vector<2x64xf32>
    %104 = vector.extract_strided_slice %101 {offsets = [0, 64], sizes = [2, 64], strides = [1, 1]} : vector<2x256xf32> to vector<2x64xf32>
    %105 = vector.extract_strided_slice %102 {offsets = [0, 128], sizes = [2, 64], strides = [1, 1]} : vector<2x256xf32> to vector<2x64xf32>
    %106 = vector.extract_strided_slice %101 {offsets = [0, 192], sizes = [2, 64], strides = [1, 1]} : vector<2x256xf32> to vector<2x64xf32>
    %107 = arith.mulf %104, %89 : vector<2x64xf32>
    %108 = arith.mulf %103, %105 : vector<2x64xf32>
    %109 = arith.addf %107, %108 : vector<2x64xf32>
    %110 = math.tanh %109 : vector<2x64xf32>
    %111 = arith.mulf %106, %110 : vector<2x64xf32>
    %112 = vector.extract_strided_slice %8 {offsets = [0, 5, 0], sizes = [2, 1, 256], strides = [1, 1, 1]} : vector<2x8x256xf32> to vector<2x1x256xf32>
    %113 = vector.shape_cast %112 : vector<2x1x256xf32> to vector<2x256xf32>
    %114 = arith.truncf %111 : vector<2x64xf32> to vector<2x64xbf16>
    %cst_18 = arith.constant dense<0.000000e+00> : vector<2x256xf32>
    %115 = tpu.matmul %114, %0, %cst_18 {dimension_numbers = #tpu.dot_dimension_numbers<[1], [0], [0], [1], [0, 0, 1, 1], [], []>} : vector<2x64xbf16>, vector<64x256xbf16>, vector<2x256xf32> -> vector<2x256xf32>
    %116 = arith.addf %115, %113 : vector<2x256xf32>
    %117 = arith.negf %116 : vector<2x256xf32>
    %118 = math.exp %117 : vector<2x256xf32>
    %cst_19 = arith.constant 1.000000e+00 : f32
    %119 = vector.broadcast %cst_19 : f32 to vector<2x256xf32>
    %120 = arith.addf %119, %118 : vector<2x256xf32>
    %121 = arith.divf %119, %120 : vector<2x256xf32>
    %122 = math.tanh %116 : vector<2x256xf32>
    %123 = vector.extract_strided_slice %121 {offsets = [0, 0], sizes = [2, 64], strides = [1, 1]} : vector<2x256xf32> to vector<2x64xf32>
    %124 = vector.extract_strided_slice %121 {offsets = [0, 64], sizes = [2, 64], strides = [1, 1]} : vector<2x256xf32> to vector<2x64xf32>
    %125 = vector.extract_strided_slice %122 {offsets = [0, 128], sizes = [2, 64], strides = [1, 1]} : vector<2x256xf32> to vector<2x64xf32>
    %126 = vector.extract_strided_slice %121 {offsets = [0, 192], sizes = [2, 64], strides = [1, 1]} : vector<2x256xf32> to vector<2x64xf32>
    %127 = arith.mulf %124, %109 : vector<2x64xf32>
    %128 = arith.mulf %123, %125 : vector<2x64xf32>
    %129 = arith.addf %127, %128 : vector<2x64xf32>
    %130 = math.tanh %129 : vector<2x64xf32>
    %131 = arith.mulf %126, %130 : vector<2x64xf32>
    %132 = vector.extract_strided_slice %8 {offsets = [0, 6, 0], sizes = [2, 1, 256], strides = [1, 1, 1]} : vector<2x8x256xf32> to vector<2x1x256xf32>
    %133 = vector.shape_cast %132 : vector<2x1x256xf32> to vector<2x256xf32>
    %134 = arith.truncf %131 : vector<2x64xf32> to vector<2x64xbf16>
    %cst_20 = arith.constant dense<0.000000e+00> : vector<2x256xf32>
    %135 = tpu.matmul %134, %0, %cst_20 {dimension_numbers = #tpu.dot_dimension_numbers<[1], [0], [0], [1], [0, 0, 1, 1], [], []>} : vector<2x64xbf16>, vector<64x256xbf16>, vector<2x256xf32> -> vector<2x256xf32>
    %136 = arith.addf %135, %133 : vector<2x256xf32>
    %137 = arith.negf %136 : vector<2x256xf32>
    %138 = math.exp %137 : vector<2x256xf32>
    %cst_21 = arith.constant 1.000000e+00 : f32
    %139 = vector.broadcast %cst_21 : f32 to vector<2x256xf32>
    %140 = arith.addf %139, %138 : vector<2x256xf32>
    %141 = arith.divf %139, %140 : vector<2x256xf32>
    %142 = math.tanh %136 : vector<2x256xf32>
    %143 = vector.extract_strided_slice %141 {offsets = [0, 0], sizes = [2, 64], strides = [1, 1]} : vector<2x256xf32> to vector<2x64xf32>
    %144 = vector.extract_strided_slice %141 {offsets = [0, 64], sizes = [2, 64], strides = [1, 1]} : vector<2x256xf32> to vector<2x64xf32>
    %145 = vector.extract_strided_slice %142 {offsets = [0, 128], sizes = [2, 64], strides = [1, 1]} : vector<2x256xf32> to vector<2x64xf32>
    %146 = vector.extract_strided_slice %141 {offsets = [0, 192], sizes = [2, 64], strides = [1, 1]} : vector<2x256xf32> to vector<2x64xf32>
    %147 = arith.mulf %144, %129 : vector<2x64xf32>
    %148 = arith.mulf %143, %145 : vector<2x64xf32>
    %149 = arith.addf %147, %148 : vector<2x64xf32>
    %150 = math.tanh %149 : vector<2x64xf32>
    %151 = arith.mulf %146, %150 : vector<2x64xf32>
    %152 = vector.extract_strided_slice %8 {offsets = [0, 7, 0], sizes = [2, 1, 256], strides = [1, 1, 1]} : vector<2x8x256xf32> to vector<2x1x256xf32>
    %153 = vector.shape_cast %152 : vector<2x1x256xf32> to vector<2x256xf32>
    %154 = arith.truncf %151 : vector<2x64xf32> to vector<2x64xbf16>
    %cst_22 = arith.constant dense<0.000000e+00> : vector<2x256xf32>
    %155 = tpu.matmul %154, %0, %cst_22 {dimension_numbers = #tpu.dot_dimension_numbers<[1], [0], [0], [1], [0, 0, 1, 1], [], []>} : vector<2x64xbf16>, vector<64x256xbf16>, vector<2x256xf32> -> vector<2x256xf32>
    %156 = arith.addf %155, %153 : vector<2x256xf32>
    %157 = arith.negf %156 : vector<2x256xf32>
    %158 = math.exp %157 : vector<2x256xf32>
    %cst_23 = arith.constant 1.000000e+00 : f32
    %159 = vector.broadcast %cst_23 : f32 to vector<2x256xf32>
    %160 = arith.addf %159, %158 : vector<2x256xf32>
    %161 = arith.divf %159, %160 : vector<2x256xf32>
    %162 = math.tanh %156 : vector<2x256xf32>
    %163 = vector.extract_strided_slice %161 {offsets = [0, 0], sizes = [2, 64], strides = [1, 1]} : vector<2x256xf32> to vector<2x64xf32>
    %164 = vector.extract_strided_slice %161 {offsets = [0, 64], sizes = [2, 64], strides = [1, 1]} : vector<2x256xf32> to vector<2x64xf32>
    %165 = vector.extract_strided_slice %162 {offsets = [0, 128], sizes = [2, 64], strides = [1, 1]} : vector<2x256xf32> to vector<2x64xf32>
    %166 = vector.extract_strided_slice %161 {offsets = [0, 192], sizes = [2, 64], strides = [1, 1]} : vector<2x256xf32> to vector<2x64xf32>
    %167 = arith.mulf %164, %149 : vector<2x64xf32>
    %168 = arith.mulf %163, %165 : vector<2x64xf32>
    %169 = arith.addf %167, %168 : vector<2x64xf32>
    %170 = math.tanh %169 : vector<2x64xf32>
    %171 = arith.mulf %166, %170 : vector<2x64xf32>
    %172 = arith.truncf %171 : vector<2x64xf32> to vector<2x64xbf16>
    %cst_24 = arith.constant dense<0.000000e+00> : vector<2x256xf32>
    %173 = tpu.matmul %172, %0, %cst_24 {dimension_numbers = #tpu.dot_dimension_numbers<[1], [0], [0], [1], [0, 0, 1, 1], [], []>} : vector<2x64xbf16>, vector<64x256xbf16>, vector<2x256xf32> -> vector<2x256xf32>
    %174 = arith.addf %173, %31 : vector<2x256xf32>
    %175 = arith.negf %174 : vector<2x256xf32>
    %176 = math.exp %175 : vector<2x256xf32>
    %cst_25 = arith.constant 1.000000e+00 : f32
    %177 = vector.broadcast %cst_25 : f32 to vector<2x256xf32>
    %178 = arith.addf %177, %176 : vector<2x256xf32>
    %179 = arith.divf %177, %178 : vector<2x256xf32>
    %180 = math.tanh %174 : vector<2x256xf32>
    %181 = vector.extract_strided_slice %179 {offsets = [0, 0], sizes = [2, 64], strides = [1, 1]} : vector<2x256xf32> to vector<2x64xf32>
    %182 = vector.extract_strided_slice %179 {offsets = [0, 64], sizes = [2, 64], strides = [1, 1]} : vector<2x256xf32> to vector<2x64xf32>
    %183 = vector.extract_strided_slice %180 {offsets = [0, 128], sizes = [2, 64], strides = [1, 1]} : vector<2x256xf32> to vector<2x64xf32>
    %184 = vector.extract_strided_slice %179 {offsets = [0, 192], sizes = [2, 64], strides = [1, 1]} : vector<2x256xf32> to vector<2x64xf32>
    %185 = arith.mulf %182, %169 : vector<2x64xf32>
    %186 = arith.mulf %181, %183 : vector<2x64xf32>
    %187 = arith.addf %185, %186 : vector<2x64xf32>
    %188 = math.tanh %187 : vector<2x64xf32>
    %189 = arith.mulf %184, %188 : vector<2x64xf32>
    %190 = vector.extract_strided_slice %189 {offsets = [0, 32], sizes = [2, 32], strides = [1, 1]} : vector<2x64xf32> to vector<2x32xf32>
    %c0_26 = arith.constant 0 : index
    %c0_27 = arith.constant 0 : index
    %191 = vector.load %arg4[%c0_26, %c0_27] : memref<32x6xf32, #tpu.memory_space<vmem>>, vector<32x6xf32>
    %cst_28 = arith.constant dense<0.000000e+00> : vector<2x6xf32>
    %192 = tpu.matmul %190, %191, %cst_28 {dimension_numbers = #tpu.dot_dimension_numbers<[1], [0], [0], [1], [0, 0, 1, 1], [], []>} : vector<2x32xf32>, vector<32x6xf32>, vector<2x6xf32> -> vector<2x6xf32>
    %c0_29 = arith.constant 0 : index
    %c0_30 = arith.constant 0 : index
    %193 = vector.load %arg5[%c0_29, %c0_30] : memref<1x6xf32, #tpu.memory_space<vmem>>, vector<1x6xf32>
    %194 = vector.broadcast %193 : vector<1x6xf32> to vector<2x6xf32>
    %195 = arith.addf %192, %194 : vector<2x6xf32>
    %c0_31 = arith.constant 0 : index
    %c0_32 = arith.constant 0 : index
    %196 = vector.load %arg6[%c0_31, %c0_32] : memref<2x6xf32, #tpu.memory_space<vmem>>, vector<2x6xf32>
    tpu.vector_store %arg6[%c0_31, %c0_32], %195 {strides = array<i32>} : memref<2x6xf32, #tpu.memory_space<vmem>>, vector<2x6xf32>,
    return
  }
}

</mosaic_0001>

<bundles_post_ra>
// kernel: ego_rnn_forward.1
= control target key start
LH: loop header
LB: loop body
LE: loop exit
PB: predicated region body
PF: predicated region fallthrough
CT: control target
= control target key end

     0   :  { %s1675_s0 = inlined_call_operand.vmem [shape: f32[16,64], index: 0, kind: input, shape index: {}]   ;;  %s1676_s1 = inlined_call_operand.vmem [shape: f32[64,256], index: 1, kind: input, shape index: {}]   ;;  %s1677_s2 = inlined_call_operand.vmem [shape: f32[1,256], index: 2, kind: input, shape index: {}]   ;;  %s1678_s3 = inlined_call_operand.vmem [shape: bf16[64,256], index: 3, kind: input, shape index: {}]   ;;  %s1679_s4 = inlined_call_operand.vmem [shape: f32[32,6], index: 4, kind: input, shape index: {}]   ;;  %s1680_s5 = inlined_call_operand.vmem [shape: f32[1,6], index: 5, kind: input, shape index: {}]   ;;  %s1681_s6 = inlined_call_operand.hbm [shape: f32[2,6], index: 6, kind: output, shape index: {}]  }
   0x1   :  { %v49_v0 = vld [vmem:[%s1676_s1 + $0x70] sm:$0xff]  ;;  %v47_v1 = vld [vmem:[%s1676_s1 + $0x60] sm:$0xff]  ;;  %v50_v2 = vld [vmem:[%s1676_s1 + $0x78] sm:$0xff] }
   0x2   :  { %66 = vmatpush.msra.mxu0 %v49_v0  ;;  %v45_v3 = vld [vmem:[%s1676_s1 + $0x50] sm:$0xff]  ;;  %89 = vmatpush.msra.mxu1 %v50_v2  ;;  %v48_v4 = vld [vmem:[%s1676_s1 + $0x68] sm:$0xff]  ;;  %v46_v5 = vld [vmem:[%s1676_s1 + $0x58] sm:$0xff] }
   0x3   :  { %v43_v6 = vld [vmem:[%s1676_s1 + $0x40] sm:$0xff]  ;;  %v44_v7 = vld [vmem:[%s1676_s1 + $0x48] sm:$0xff]  ;;  %v41_v8 = vld [vmem:[%s1676_s1 + $0x30] sm:$0xff] }
   0x4   :  { %67 = vmatpush.msra.mxu0 %v47_v1  ;;  %90 = vmatpush.msra.mxu1 %v48_v4 }
   0x6   :  { %68 = vmatpush.msra.mxu0 %v45_v3  ;;  %91 = vmatpush.msra.mxu1 %v46_v5 }
   0x7   :  { %11 = vsyncpa [#allocation3], 0  ;;  %v42_v9 = vld [vmem:[%s1676_s1 + $0x38] sm:$0xff]  ;;  %v39_v10 = vld [vmem:[%s1676_s1 + $0x20] sm:$0xff]  ;;  %vm51_vm0 = vcmask 523264   ;;  %vm220_vm1 = vcmask 1041409  }
   0x8   :  { %69 = vmatpush.msra.mxu0 %v43_v6  ;;  %92 = vmatpush.msra.mxu1 %v44_v7  ;;  %v40_v11 = vld [vmem:[%s1676_s1 + $0x28] sm:$0xff]  ;;  %v37_v12 = vld [vmem:[%s1676_s1 + $0x10] sm:$0xff]  ;;  %v38_v13 = vld [vmem:[%s1676_s1 + $0x18] sm:$0xff]  ;;  %s1262_s23 = smov [#allocation2]   ;;  %s1017_s27 = sshll.u32 %s1681_s6, 4  ;;  %s1018_s27 = int_to_ptr.hbm [resolvable:$true] %s1017_s27 }
   0x9   :  { %v35_v14 = vld [vmem:[%s1676_s1] sm:$0xff]  ;;  %v36_v16 = vld [vmem:[%s1676_s1 + $0x8] sm:$0xff]  ;;  %s1015_s24 = sshll.u32 %s1262_s23, 4  ;;  %s1016_s24 = int_to_ptr.vmem [resolvable:$true] %s1015_s24 }
   0xa   :  { %70 = vmatpush.msra.mxu0 %v41_v8  ;;  %93 = vmatpush.msra.mxu1 %v42_v9  ;;  %v33_v15 = vld [vmem:[%s1675_s0] sm:$0xff]  ;;  %v34_v17 = vld [vmem:[%s1675_s0 + $0x8] sm:$0xff]  ;;  %s1260_s0 = smov 64  }
   0xb   :  { %v104_v18 = vld [vmem:[%s1677_s2] sm:$0x3] }
   0xc   :  { %71 = vmatpush.msra.mxu0 %v39_v10  ;;  %94 = vmatpush.msra.mxu1 %v40_v11  ;;  %v1359_v19 = vperm.slane %v104_v18, 0  ;;  %v1362_v23 = vperm.slane %v104_v18, 1 }
   0xe   :  { %72 = vmatpush.msra.mxu0 %v37_v12  ;;  %95 = vmatpush.msra.mxu1 %v38_v13 }
  0x10   :  { %73 = vmatpush.msra.mxu0 %v35_v14  ;;  %96 = vmatpush.msra.mxu1 %v36_v16 }
  0x11   :  { %1026 = vmatmul.msk.f32.vlgmr.msra.gmra.mxu0 %vm51_vm0, %v33_v15  ;;  %1028 = vmatmul.msk.f32.vlgmr.msra.gmra.mxu1 %vm51_vm0, %v33_v15  ;;  %v114_v15 = vlaneseq }
  0x19   :  { %1027 = vmatmul.msk.f32.gmra.mxu0 %vm51_vm0, %v34_v17  ;;  %1029 = vmatmul.msk.f32.gmra.mxu1 %vm51_vm0, %v34_v17 }
  0x8e   :  { %v75_v20 = vpop.f32.mrf.mxu0  ;;  %v98_v22 = vpop.f32.mrf.mxu1 }
  0x8f   :  { %v110_v21 = vadd.f32 %v1359_v19, %v75_v20  ;;  %v1365_v25 = vadd.f32 %v1362_v23, %v98_v22 }
  0x91   :  { %v1031_v24 = vmul.f32 -1.442695, %v110_v21  ;;  %v271_v27 = vrot.slane %v1365_v25, 1  ;;  %v269_v30 = vrot.slane %v110_v21, 1  ;;  %v363_v35 = vrot.slane %v110_v21, 2 }
  0x92   :  { %v366_v39 = vrot.slane %v1365_v25, 2  ;;  %v452_v43 = vrot.slane %v110_v21, 3  ;;  %v455_v44 = vrot.slane %v1365_v25, 3  ;;  %v541_v45 = vrot.slane %v110_v21, 4 }
  0x93   :  { %1113 = vpow2.f32 %v1031_v24  ;;  %v544_v47 = vrot.slane %v1365_v25, 4  ;;  %v630_v48 = vrot.slane %v110_v21, 5  ;;  %v633_v49 = vrot.slane %v1365_v25, 5 }
  0x94   :  { %v719_v52 = vrot.slane %v110_v21, 6  ;;  %v722_v53 = vrot.slane %v1365_v25, 6  ;;  %v808_v7 = vrot.slane %v110_v21, 7  ;;  %v811_v11 = vrot.slane %v1365_v25, 7 }
  0x95   :  { %v115_v24 = vand.u32 127, %v114_v15  ;;  %v1106_v15 = vld [vmem:[%s1678_s3 + $0x34] sm:$0xf] }
  0x96   :  { %v78_v26 = vpop.f32.mrf.mxu0  ;;  %v101_v29 = vpop.f32.mrf.mxu1 }
  0x97   :  { %v112_v28 = vadd.f32 %v1359_v19, %v78_v26  ;;  %v1370_v31 = vadd.f32 %v1362_v23, %v101_v29  ;;  %vm116_vm9 = vcmp.lt.s32.totalorder %v115_v24, 32 }
  0x99   :  { %v1114_v32 = vpop.eup %1113  ;;  %v1033_v33 = vmul.f32 -1.442695, %v112_v28  ;;  %v1373_v34 = vsel %vm220_vm1, %v112_v28, %v269_v30  ;;  %v364_v36 = vrot.slane %v112_v28, 1  ;;  %v1379_v38 = vsel %vm220_vm1, %v1370_v31, %v271_v27 }
  0x9a   :  { %v1375_v37 = vadd.f32 1.0, %v1114_v32  ;;  %v367_v41 = vrot.slane %v1370_v31, 1  ;;  %v453_v42 = vrot.slane %v112_v28, 2  ;;  %v456_v51 = vrot.slane %v1370_v31, 2 }
  0x9b   :  { %1115 = vpow2.f32 %v1033_v33  ;;  %v1383_v40 = vsel %vm220_vm1, %v364_v36, %v363_v35  ;;  %v542_v54 = vrot.slane %v112_v28, 3  ;;  %v545_v55 = vrot.slane %v1370_v31, 3 }
  0x9c   :  { %1117 = vrcp.f32 %v1375_v37  ;;  %v1389_v46 = vsel %vm220_vm1, %v367_v41, %v366_v39  ;;  %v1394_v50 = vsel %vm220_vm1, %v453_v42, %v452_v43  ;;  %v631_v56 = vrot.slane %v112_v28, 4 }
  0x9d   :  { %v634_v57 = vrot.slane %v1370_v31, 4  ;;  %v1401_v59 = vsel %vm220_vm1, %v456_v51, %v455_v44  ;;  %v720_v60 = vrot.slane %v112_v28, 5  ;;  %v723_v61 = vrot.slane %v1370_v31, 5 }
  0x9e   :  { %v809_v62 = vrot.slane %v112_v28, 6  ;;  %v1405_v1 = vsel %vm220_vm1, %v542_v54, %v541_v45  ;;  %v1408_v2 = vsel %vm220_vm1, %v545_v55, %v544_v47  ;;  %v1411_v3 = vsel %vm220_vm1, %v631_v56, %v630_v48 }
  0x9f   :  { %v1415_v5 = vsel %vm220_vm1, %v634_v57, %v633_v49  ;;  %v1418_v6 = vsel %vm220_vm1, %v720_v60, %v719_v52  ;;  %v1421_v9 = vsel %vm220_vm1, %v723_v61, %v722_v53  ;;  %v812_v13 = vrot.slane %v1370_v31, 6 }
  0xa0   :  { %v1424_v10 = vsel %vm220_vm1, %v809_v62, %v808_v7  ;;  %v146_v20 = vand.u32 2147483648, %v1375_v37  ;;  %vm140_vm3 = vweird.f32 %v1375_v37  ;;  %v144_v21 = vand.u32 2147483647, %v1375_v37 }
  0xa1   :  { %v1116_v58 = vpop.eup %1115  ;;  %v1429_v16 = vsel %vm220_vm1, %v812_v13, %v811_v11  ;;  %v1259_v44 = vmov 0.0   ;;  %v1034_v54 = vmul.f32 -1.442695, %v1370_v31  ;;  %v1032_v55 = vmul.f32 -1.442695, %v1365_v25 }
  0xa2   :  { %v1118_v63 = vpop.eup %1117  ;;  %v133_v0 = vadd.f32 1.0, %v1116_v58  ;;  %v147_v30 = vor.u32 1.1754944e-38, %v146_v20  ;;  %vm145_vm6 = vcmp.eq.f32.partialorder %v144_v21, 8.507059e+37  ;;  %v1030_v45 = vsel %vm116_vm9, 1.0, %v1259_v44  ;;  %v1061_v13 = vld [vmem:[%s1678_s3 + $0x30] sm:$0xf] }
  0xa3   :  { %v136_v4 = vmul.f32 %v1118_v63, %v1375_v37  ;;  %vm141_vm2 = vweird.f32 %v1118_v63  ;;  %v1053_v20 = vld [vmem:[%s1678_s3 + $0x20] sm:$0xf]  ;;  %v1105_v21 = vld [vmem:[%s1678_s3 + $0x24] sm:$0xf0] }
  0xa4   :  { %1119 = vrcp.f32 %v133_v0  ;;  %vm142_vm4 = vmor %vm140_vm3, %vm141_vm2  ;;  %v176_v26 = vand.u32 2147483648, %v133_v0  ;;  %v174_v29 = vand.u32 2147483647, %v133_v0  ;;  %vm170_vm7 = vweird.f32 %v133_v0 }
  0xa5   :  { %v137_v8 = vsub.f32 1.0, %v136_v4  ;;  %1121 = vtanh.f32 %v1365_v25 }
  0xa6   :  { %1123 = vtanh.f32 %v1370_v31  ;;  %v177_v39 = vor.u32 1.1754944e-38, %v176_v26  ;;  %vm175_vm10 = vcmp.eq.f32.partialorder %v174_v29, 8.507059e+37  ;;  %v1104_v26 = vld [vmem:[%s1678_s3 + $0x24] sm:$0xf] }
  0xa7   :  { %v138_v12 = vmul.f32 %v1118_v63, %v137_v8 }
  0xa9   :  { %v139_v17 = vadd.f32 %v1118_v63, %v138_v12 }
  0xaa   :  { %v1120_v14 = vpop.eup %1119 }
  0xab   :  { %v166_v18 = vmul.f32 %v1120_v14, %v133_v0  ;;  %v143_v27 = vsel %vm142_vm4, %v1118_v63, %v139_v17  ;;  %vm171_vm5 = vweird.f32 %v1120_v14  ;;  %v1122_v32 = vpop.eup %1121 }
  0xac   :  { %v1124_v35 = vpop.eup %1123  ;;  %v148_v36 = vsel %vm145_vm6, %v147_v30, %v143_v27  ;;  %vm172_vm8 = vmor %vm170_vm7, %vm171_vm5  ;;  %v1055_v27 = vld [vmem:[%s1678_s3 + $0x28] sm:$0xf0]  ;;  %v1482_v30 = vor.u32 %v1105_v21, %v1053_v20 }
  0xad   :  { %v167_v22 = vsub.f32 1.0, %v166_v18  ;;  %v197_v42 = vmul.f32 %v1122_v32, %v148_v36  ;;  %v1063_v18 = vld [vmem:[%s1678_s3 + $0x38] sm:$0xf0]  ;;  %v1486_v32 = vor.u32 %v1104_v26, %v1055_v27  ;;  %v1102_v36 = vld [vmem:[%s1678_s3 + $0x14] sm:$0xf] }
  0xae   :  { %v1470_v24 = vor.u32 %v1106_v15, %v1063_v18 }
  0xaf   :  { %v168_v28 = vmul.f32 %v1120_v14, %v167_v22  ;;  %v199_v48 = vmul.f32 %v1030_v45, %v197_v42 }
  0xb0   :  { %295 = vmatpush.bf16.msra.mxu3 %v1470_v24  ;;  %391 = vmatpush.bf16.msrb.mxu1 %v1470_v24 }
  0xb1   :  { %v169_v33 = vadd.f32 %v1120_v14, %v168_v28 }
  0xb3   :  { %v173_v41 = vsel %vm172_vm8, %v1120_v14, %v169_v33  ;;  %v1107_v14 = vld [vmem:[%s1678_s3 + $0x34] sm:$0xf0]  ;;  %v1045_v33 = vld [vmem:[%s1678_s3 + $0x10] sm:$0xf] }
  0xb4   :  { %v178_v37 = vsel %vm175_vm10, %v177_v39, %v173_v41  ;;  %v1459_v17 = vor.u32 %v1107_v14, %v1061_v13  ;;  %v1047_v39 = vld [vmem:[%s1678_s3 + $0x18] sm:$0xf0]  ;;  %296 = vmatpush.bf16.msra.mxu3 %v1486_v32  ;;  %392 = vmatpush.bf16.msrb.mxu1 %v1486_v32 }
  0xb5   :  { %v198_v43 = vmul.f32 %v1124_v35, %v178_v37  ;;  %v1103_v35 = vld [vmem:[%s1678_s3 + $0x14] sm:$0xf0] }
  0xb6   :  { %282 = vmatpush.bf16.msra.mxu2 %v1459_v17  ;;  %378 = vmatpush.bf16.msrb.mxu0 %v1459_v17 }
  0xb7   :  { %v200_v47 = vmul.f32 %v1030_v45, %v198_v43 }
  0xb9   :  { %1125 = vtanh.f32 %v200_v47  ;;  %v345_v49 = vrot.slane %v200_v47, 7  ;;  %v1504_v47 = vor.u32 %v1103_v35, %v1045_v33 }
  0xba   :  { %1127 = vtanh.f32 %v199_v48  ;;  %283 = vmatpush.bf16.msra.mxu2 %v1482_v30  ;;  %379 = vmatpush.bf16.msrb.mxu0 %v1482_v30 }
  0xbb   :  { %v1437_v51 = vsel %vm220_vm1, %v345_v49, %v199_v48  ;;  %1129 = vpow2.f32 %v1034_v54  ;;  %v1512_v49 = vor.u32 %v1102_v36, %v1047_v39  ;;  %v1100_v54 = vld [vmem:[%s1678_s3 + $0x4] sm:$0xf] }
  0xbc   :  { %1131 = vpow2.f32 %v1032_v55  ;;  %v1039_v55 = vld [vmem:[%s1678_s3 + $0x8] sm:$0xf0] }
  0xbd   :  { %297 = vmatpush.bf16.msra.mxu3 %v1512_v49  ;;  %393 = vmatpush.bf16.msrb.mxu1 %v1512_v49 }
  0xbe   :  { %284 = vmatpush.bf16.msra.mxu2 %v1504_v47  ;;  %380 = vmatpush.bf16.msrb.mxu0 %v1504_v47 }
  0xbf   :  { %v1126_v52 = vpop.eup %1125 }
  0xc0   :  { %207 = vrot.lane.b32.xlu0 %v1126_v52, %s1260_s0  ;;  %v1128_v53 = vpop.eup %1127  ;;  %v1037_v52 = vld [vmem:[%s1678_s3] sm:$0xf] }
  0xc1   :  { %v1130_v56 = vpop.eup %1129 }
  0xc2   :  { %v134_v57 = vadd.f32 1.0, %v1130_v56  ;;  %v1132_v58 = vpop.eup %1131 }
  0xc3   :  { %v132_v60 = vadd.f32 1.0, %v1132_v58 }
  0xc4   :  { %1133 = vrcp.f32 %v134_v57  ;;  %vm185_vm11 = vweird.f32 %v134_v57  ;;  %v191_v31 = vand.u32 2147483648, %v134_v57  ;;  %v189_v11 = vand.u32 2147483647, %v134_v57 }
  0xc5   :  { %1135 = vrcp.f32 %v132_v60  ;;  %vm155_vm15 = vweird.f32 %v132_v60  ;;  %v161_v42 = vand.u32 2147483648, %v132_v60  ;;  %v159_v45 = vand.u32 2147483647, %v132_v60 }
  0xc6   :  { %v192_v22 = vor.u32 1.1754944e-38, %v191_v31  ;;  %vm190_vm14 = vcmp.eq.f32.partialorder %v189_v11, 8.507059e+37 }
  0xc7   :  { %v162_v56 = vor.u32 1.1754944e-38, %v161_v42  ;;  %vm160_vm4 = vcmp.eq.f32.partialorder %v159_v45, 8.507059e+37 }
  0xc8   :  { %205 = vrot.lane.b32.xlu0 %v1128_v53, %s1260_s0  ;;  %v1101_v53 = vld [vmem:[%s1678_s3 + $0x4] sm:$0xf0] }
  0xca   :  { %v1134_v61 = vpop.eup %1133 }
  0xcb   :  { %v181_v62 = vmul.f32 %v1134_v61, %v134_v57  ;;  %v1443_v0 = vpop.eup %1135  ;;  %vm186_vm12 = vweird.f32 %v1134_v61 }
  0xcc   :  { %v151_v7 = vmul.f32 %v1443_v0, %v132_v60  ;;  %vm1446_vm13 = vmor %vm185_vm11, %vm186_vm12  ;;  %vm156_vm2 = vweird.f32 %v1443_v0  ;;  %v1531_v60 = vor.u32 %v1101_v53, %v1037_v52 }
  0xcd   :  { %v182_v63 = vsub.f32 1.0, %v181_v62  ;;  %vm1507_vm3 = vmor %vm155_vm15, %vm156_vm2 }
  0xce   :  { %v152_v12 = vsub.f32 1.0, %v151_v7  ;;  %285 = vmatpush.bf16.msra.mxu2 %v1531_v60  ;;  %381 = vmatpush.bf16.msrb.mxu0 %v1531_v60 }
  0xcf   :  { %v183_v4 = vmul.f32 %v1134_v61, %v182_v63 }
  0xd0   :  { %v153_v29 = vmul.f32 %v1443_v0, %v152_v12 }
  0xd1   :  { %v184_v8 = vadd.f32 %v1134_v61, %v183_v4 }
  0xd2   :  { %v154_v44 = vadd.f32 %v1443_v0, %v153_v29  ;;  %467 = vmatpush.bf16.msrb.mxu2 %v1459_v17  ;;  %556 = vmatpush.bf16.msra.mxu0 %v1459_v17 }
  0xd3   :  { %v188_v28 = vsel %vm1446_vm13, %v1134_v61, %v184_v8  ;;  %v1535_v61 = vor.u32 %v1100_v54, %v1039_v55 }
  0xd4   :  { %v193_v41 = vsel %vm190_vm14, %v192_v22, %v188_v28  ;;  %v158_v58 = vsel %vm1507_vm3, %v1443_v0, %v154_v44 }
  0xd5   :  { %v163_v62 = vsel %vm160_vm4, %v162_v56, %v158_v58  ;;  %298 = vmatpush.bf16.msra.mxu3 %v1535_v61  ;;  %394 = vmatpush.bf16.msrb.mxu1 %v1535_v61 }
  0xd6   :  { %468 = vmatpush.bf16.msrb.mxu2 %v1482_v30  ;;  %557 = vmatpush.bf16.msra.mxu0 %v1482_v30 }
  0xd9   :  { %480 = vmatpush.bf16.msrb.mxu3 %v1470_v24  ;;  %569 = vmatpush.bf16.msra.mxu1 %v1470_v24 }
  0xda   :  { %469 = vmatpush.bf16.msrb.mxu2 %v1504_v47  ;;  %558 = vmatpush.bf16.msra.mxu0 %v1504_v47 }
  0xdd   :  { %481 = vmatpush.bf16.msrb.mxu3 %v1486_v32  ;;  %570 = vmatpush.bf16.msra.mxu1 %v1486_v32 }
  0xde   :  { %470 = vmatpush.bf16.msrb.mxu2 %v1531_v60  ;;  %559 = vmatpush.bf16.msra.mxu0 %v1531_v60 }
  0xe1   :  { %482 = vmatpush.bf16.msrb.mxu3 %v1512_v49  ;;  %571 = vmatpush.bf16.msra.mxu1 %v1512_v49 }
  0xe5   :  { %483 = vmatpush.bf16.msrb.mxu3 %v1535_v61  ;;  %572 = vmatpush.bf16.msra.mxu1 %v1535_v61 }
 0x132   :  { %v208_v37 = vpop.permute.xlu0 %207 }
 0x133   :  { %v212_v43 = vmul.f32 %v208_v37, %v193_v41 }
 0x135   :  { %v214_v57 = vpack.c.bf16 %v212_v43, %v212_v43 }
 0x137   :  { %v218_v4 = vunpack.c.l.b16 %v214_v57 }
 0x139   :  { %v219_v31 = vrot.slane %v218_v4, 7 }
 0x13a   :  { %v206_v63 = vpop.permute.xlu0 %205 }
 0x13b   :  { %v211_v7 = vmul.f32 %v206_v63, %v163_v62 }
 0x13d   :  { %v213_v0 = vpack.c.bf16 %v211_v7, %v211_v7 }
 0x13f   :  { %v217_v8 = vunpack.c.l.b16 %v213_v0 }
 0x141   :  { %v221_v25 = vsel %vm220_vm1, %v219_v31, %v217_v8 }
 0x142   :  { %v222_v11 = vpack.c.b16 %v221_v25, %v221_v25 }
 0x144   :  { %223 = vrot.lane.b32.xlu1 %v222_v11, %s1260_s0 }
 0x14c   :  { %347 = vrot.lane.b32.xlu1 %v1437_v51, %s1260_s0 }
 0x1b6   :  { %v224_v12 = vpop.permute.xlu1 %223 }
 0x1b7   :  { %1067 = vmatmul.msk.bf16.vlgmr.msra.gmra.mxu2 %vm51_vm0, %v224_v12  ;;  %1068 = vmatmul.msk.bf16.vlgmr.msra.gmra.mxu3 %vm51_vm0, %v224_v12 }
 0x1b8   :  { %645 = vmatpush.bf16.msra.mxu2 %v1459_v17  ;;  %658 = vmatpush.bf16.msra.mxu3 %v1470_v24 }
 0x1bc   :  { %646 = vmatpush.bf16.msra.mxu2 %v1482_v30  ;;  %659 = vmatpush.bf16.msra.mxu3 %v1486_v32 }
 0x1be   :  { %v348_v54 = vpop.permute.xlu1 %347 }
 0x1c0   :  { %647 = vmatpush.bf16.msra.mxu2 %v1504_v47  ;;  %660 = vmatpush.bf16.msra.mxu3 %v1512_v49 }
 0x1c4   :  { %648 = vmatpush.bf16.msra.mxu2 %v1531_v60  ;;  %661 = vmatpush.bf16.msra.mxu3 %v1535_v61 }
 0x23a   :  { %v287_v51 = vpop.f32.mrf.mxu2  ;;  %v300_v13 = vpop.f32.mrf.mxu3 }
 0x23b   :  { %v288_v14 = vadd.f32 %v287_v51, %v1373_v34  ;;  %v301_v27 = vadd.f32 %v300_v13, %v1379_v38 }
 0x23d   :  { %v1069_v15 = vmul.f32 -1.442695, %v288_v14  ;;  %v1070_v44 = vmul.f32 -1.442695, %v301_v27 }
 0x23f   :  { %1137 = vpow2.f32 %v1069_v15 }
 0x242   :  { %v289_v18 = vpop.f32.mrf.mxu2  ;;  %v302_v20 = vpop.f32.mrf.mxu3 }
 0x245   :  { %v1138_v21 = vpop.eup %1137 }
 0x246   :  { %v310_v22 = vadd.f32 1.0, %v1138_v21 }
 0x248   :  { %1139 = vrcp.f32 %v310_v22  ;;  %v323_v33 = vand.u32 2147483648, %v310_v22  ;;  %v321_v36 = vand.u32 2147483647, %v310_v22  ;;  %vm317_vm5 = vweird.f32 %v310_v22 }
 0x249   :  { %1141 = vtanh.f32 %v301_v27 }
 0x24a   :  { %v324_v34 = vor.u32 1.1754944e-38, %v323_v33  ;;  %vm322_vm7 = vcmp.eq.f32.partialorder %v321_v36, 8.507059e+37  ;;  %1143 = vpow2.f32 %v1070_v44 }
 0x24e   :  { %v1140_v26 = vpop.eup %1139 }
 0x24f   :  { %v313_v28 = vmul.f32 %v1140_v26, %v310_v22  ;;  %vm318_vm1 = vweird.f32 %v1140_v26  ;;  %v1142_v37 = vpop.eup %1141 }
 0x250   :  { %vm319_vm6 = vmor %vm317_vm5, %vm318_vm1  ;;  %v1144_v38 = vpop.eup %1143 }
 0x251   :  { %v314_v29 = vsub.f32 1.0, %v313_v28  ;;  %v311_v45 = vadd.f32 1.0, %v1144_v38 }
 0x253   :  { %v315_v35 = vmul.f32 %v1140_v26, %v314_v29  ;;  %1145 = vrcp.f32 %v311_v45  ;;  %v338_v63 = vand.u32 2147483648, %v311_v45  ;;  %vm332_vm9 = vweird.f32 %v311_v45 }
 0x254   :  { %v336_v4 = vand.u32 2147483647, %v311_v45 }
 0x255   :  { %v316_v39 = vadd.f32 %v1140_v26, %v315_v35  ;;  %v339_v0 = vor.u32 1.1754944e-38, %v338_v63 }
 0x256   :  { %vm337_vm11 = vcmp.eq.f32.partialorder %v336_v4, 8.507059e+37 }
 0x257   :  { %v320_v41 = vsel %vm319_vm6, %v1140_v26, %v316_v39 }
 0x258   :  { %v325_v42 = vsel %vm322_vm7, %v324_v34, %v320_v41 }
 0x259   :  { %v351_v43 = vmul.f32 %v1142_v37, %v325_v42  ;;  %v1146_v48 = vpop.eup %1145  ;;  %v350_v56 = vmul.f32 %v348_v54, %v325_v42 }
 0x25a   :  { %v328_v52 = vmul.f32 %v1146_v48, %v311_v45  ;;  %vm333_vm8 = vweird.f32 %v1146_v48 }
 0x25b   :  { %353 = vrot.lane.b32.xlu2 %v351_v43, %s1260_s0  ;;  %vm334_vm10 = vmor %vm332_vm9, %vm333_vm8 }
 0x25c   :  { %v329_v53 = vsub.f32 1.0, %v328_v52 }
 0x25e   :  { %v330_v55 = vmul.f32 %v1146_v48, %v329_v53 }
 0x260   :  { %v331_v62 = vadd.f32 %v1146_v48, %v330_v55 }
 0x262   :  { %v335_v7 = vsel %vm334_vm10, %v1146_v48, %v331_v62 }
 0x263   :  { %v340_v8 = vsel %vm337_vm11, %v339_v0, %v335_v7 }
 0x2b5   :  { %v354_v57 = vpop.permute.xlu2 %353 }
 0x2b6   :  { %v1575_v58 = vadd.f32 %v354_v57, %v350_v56 }
 0x2b8   :  { %1147 = vtanh.f32 %v1575_v58 }
 0x2be   :  { %v1148_v31 = vpop.eup %1147 }
 0x2bf   :  { %v358_v25 = vmul.f32 %v1148_v31, %v340_v8 }
 0x2c1   :  { %v359_v11 = vpack.c.bf16 %v358_v25, %v358_v25 }
 0x2c3   :  { %361 = vrot.lane.b32.xlu2 %v359_v11, %s1260_s0 }
 0x31d   :  { %v362_v12 = vpop.permute.xlu2 %361 }
 0x31e   :  { %1071 = vmatmul.msk.bf16.vlgmr.msrb.gmra.mxu0 %vm51_vm0, %v362_v12  ;;  %1072 = vmatmul.msk.bf16.vlgmr.msrb.gmra.mxu1 %vm51_vm0, %v362_v12 }
 0x31f   :  { %734 = vmatpush.bf16.msrb.mxu0 %v1459_v17  ;;  %747 = vmatpush.bf16.msrb.mxu1 %v1470_v24 }
 0x323   :  { %735 = vmatpush.bf16.msrb.mxu0 %v1482_v30  ;;  %748 = vmatpush.bf16.msrb.mxu1 %v1486_v32 }
 0x327   :  { %736 = vmatpush.bf16.msrb.mxu0 %v1504_v47  ;;  %749 = vmatpush.bf16.msrb.mxu1 %v1512_v49 }
 0x32b   :  { %737 = vmatpush.bf16.msrb.mxu0 %v1531_v60  ;;  %750 = vmatpush.bf16.msrb.mxu1 %v1535_v61 }
 0x39b   :  { %v383_v51 = vpop.f32.mrf.mxu0  ;;  %v396_v13 = vpop.f32.mrf.mxu1 }
 0x39c   :  { %v384_v14 = vadd.f32 %v383_v51, %v1383_v40  ;;  %v397_v27 = vadd.f32 %v396_v13, %v1389_v46 }
 0x39e   :  { %v1073_v15 = vmul.f32 -1.442695, %v384_v14  ;;  %v1074_v43 = vmul.f32 -1.442695, %v397_v27 }
 0x3a0   :  { %1149 = vpow2.f32 %v1073_v15 }
 0x3a3   :  { %v385_v18 = vpop.f32.mrf.mxu0  ;;  %v398_v20 = vpop.f32.mrf.mxu1 }
 0x3a6   :  { %v1150_v21 = vpop.eup %1149 }
 0x3a7   :  { %v406_v22 = vadd.f32 1.0, %v1150_v21 }
 0x3a9   :  { %1151 = vrcp.f32 %v406_v22  ;;  %v419_v33 = vand.u32 2147483648, %v406_v22  ;;  %v417_v36 = vand.u32 2147483647, %v406_v22  ;;  %vm413_vm13 = vweird.f32 %v406_v22 }
 0x3aa   :  { %1153 = vtanh.f32 %v397_v27 }
 0x3ab   :  { %v420_v40 = vor.u32 1.1754944e-38, %v419_v33  ;;  %vm418_vm15 = vcmp.eq.f32.partialorder %v417_v36, 8.507059e+37  ;;  %1155 = vpow2.f32 %v1074_v43 }
 0x3af   :  { %v1152_v26 = vpop.eup %1151 }
 0x3b0   :  { %v409_v28 = vmul.f32 %v1152_v26, %v406_v22  ;;  %vm414_vm12 = vweird.f32 %v1152_v26  ;;  %v1154_v41 = vpop.eup %1153 }
 0x3b1   :  { %vm415_vm14 = vmor %vm413_vm13, %vm414_vm12  ;;  %v1156_v46 = vpop.eup %1155 }
 0x3b2   :  { %v410_v29 = vsub.f32 1.0, %v409_v28  ;;  %v407_v44 = vadd.f32 1.0, %v1156_v46 }
 0x3b4   :  { %v411_v35 = vmul.f32 %v1152_v26, %v410_v29  ;;  %1157 = vrcp.f32 %v407_v44  ;;  %v434_v57 = vand.u32 2147483648, %v407_v44  ;;  %vm428_vm3 = vweird.f32 %v407_v44 }
 0x3b5   :  { %v432_v62 = vand.u32 2147483647, %v407_v44 }
 0x3b6   :  { %v412_v39 = vadd.f32 %v1152_v26, %v411_v35  ;;  %v435_v4 = vor.u32 1.1754944e-38, %v434_v57 }
 0x3b7   :  { %vm433_vm1 = vcmp.eq.f32.partialorder %v432_v62, 8.507059e+37 }
 0x3b8   :  { %v416_v34 = vsel %vm415_vm14, %v1152_v26, %v412_v39 }
 0x3b9   :  { %v421_v37 = vsel %vm418_vm15, %v420_v40, %v416_v34 }
 0x3ba   :  { %v440_v42 = vmul.f32 %v1154_v41, %v421_v37  ;;  %v1158_v38 = vpop.eup %1157  ;;  %v439_v53 = vmul.f32 %v421_v37, %v1575_v58 }
 0x3bb   :  { %v424_v45 = vmul.f32 %v1158_v38, %v407_v44  ;;  %vm429_vm2 = vweird.f32 %v1158_v38 }
 0x3bc   :  { %442 = vrot.lane.b32.xlu0 %v440_v42, %s1260_s0  ;;  %vm430_vm4 = vmor %vm428_vm3, %vm429_vm2 }
 0x3bd   :  { %v425_v48 = vsub.f32 1.0, %v424_v45 }
 0x3bf   :  { %v426_v52 = vmul.f32 %v1158_v38, %v425_v48 }
 0x3c1   :  { %v427_v56 = vadd.f32 %v1158_v38, %v426_v52 }
 0x3c3   :  { %v431_v63 = vsel %vm430_vm4, %v1158_v38, %v427_v56 }
 0x3c4   :  { %v436_v0 = vsel %vm433_vm1, %v435_v4, %v431_v63 }
 0x42e   :  { %v443_v54 = vpop.permute.xlu0 %442 }
 0x42f   :  { %v1593_v55 = vadd.f32 %v443_v54, %v439_v53 }
 0x431   :  { %1159 = vtanh.f32 %v1593_v55 }
 0x437   :  { %v1160_v7 = vpop.eup %1159 }
 0x438   :  { %v447_v31 = vmul.f32 %v1160_v7, %v436_v0 }
 0x43a   :  { %v448_v8 = vpack.c.bf16 %v447_v31, %v447_v31 }
 0x43c   :  { %450 = vrot.lane.b32.xlu1 %v448_v8, %s1260_s0 }
 0x4ae   :  { %v451_v58 = vpop.permute.xlu1 %450 }
 0x4af   :  { %1075 = vmatmul.msk.bf16.vlgmr.msrb.gmra.mxu2 %vm51_vm0, %v451_v58  ;;  %1076 = vmatmul.msk.bf16.vlgmr.msrb.gmra.mxu3 %vm51_vm0, %v451_v58 }
 0x4b0   :  { %823 = vmatpush.bf16.msrb.mxu2 %v1459_v17  ;;  %836 = vmatpush.bf16.msrb.mxu3 %v1470_v24 }
 0x4b4   :  { %824 = vmatpush.bf16.msrb.mxu2 %v1482_v30  ;;  %837 = vmatpush.bf16.msrb.mxu3 %v1486_v32 }
 0x4b8   :  { %825 = vmatpush.bf16.msrb.mxu2 %v1504_v47  ;;  %838 = vmatpush.bf16.msrb.mxu3 %v1512_v49 }
 0x4bc   :  { %826 = vmatpush.bf16.msrb.mxu2 %v1531_v60  ;;  %839 = vmatpush.bf16.msrb.mxu3 %v1535_v61 }
 0x532   :  { %v472_v25 = vpop.f32.mrf.mxu2  ;;  %v485_v11 = vpop.f32.mrf.mxu3 }
 0x533   :  { %v473_v12 = vadd.f32 %v472_v25, %v1394_v50  ;;  %v486_v21 = vadd.f32 %v485_v11, %v1401_v59 }
 0x535   :  { %v1077_v51 = vmul.f32 -1.442695, %v473_v12  ;;  %v1078_v34 = vmul.f32 -1.442695, %v486_v21 }
 0x537   :  { %1161 = vpow2.f32 %v1077_v51 }
 0x53a   :  { %v474_v13 = vpop.f32.mrf.mxu2  ;;  %v487_v14 = vpop.f32.mrf.mxu3 }
 0x53d   :  { %v1162_v15 = vpop.eup %1161 }
 0x53e   :  { %v495_v18 = vadd.f32 1.0, %v1162_v15 }
 0x540   :  { %1163 = vrcp.f32 %v495_v18  ;;  %v508_v27 = vand.u32 2147483648, %v495_v18  ;;  %v506_v29 = vand.u32 2147483647, %v495_v18  ;;  %vm502_vm6 = vweird.f32 %v495_v18 }
 0x541   :  { %1165 = vtanh.f32 %v486_v21 }
 0x542   :  { %v509_v50 = vor.u32 1.1754944e-38, %v508_v27  ;;  %vm507_vm8 = vcmp.eq.f32.partialorder %v506_v29, 8.507059e+37  ;;  %1167 = vpow2.f32 %v1078_v34 }
 0x546   :  { %v1164_v20 = vpop.eup %1163 }
 0x547   :  { %v498_v22 = vmul.f32 %v1164_v20, %v495_v18  ;;  %vm503_vm5 = vweird.f32 %v1164_v20  ;;  %v1166_v36 = vpop.eup %1165 }
 0x548   :  { %vm504_vm7 = vmor %vm502_vm6, %vm503_vm5  ;;  %v1168_v59 = vpop.eup %1167 }
 0x549   :  { %v499_v26 = vsub.f32 1.0, %v498_v22  ;;  %v496_v41 = vadd.f32 1.0, %v1168_v59 }
 0x54b   :  { %v500_v28 = vmul.f32 %v1164_v20, %v499_v26  ;;  %1169 = vrcp.f32 %v496_v41  ;;  %v523_v52 = vand.u32 2147483648, %v496_v41  ;;  %vm517_vm10 = vweird.f32 %v496_v41 }
 0x54c   :  { %v521_v53 = vand.u32 2147483647, %v496_v41 }
 0x54d   :  { %v501_v33 = vadd.f32 %v1164_v20, %v500_v28  ;;  %v524_v56 = vor.u32 1.1754944e-38, %v523_v52 }
 0x54e   :  { %vm522_vm12 = vcmp.eq.f32.partialorder %v521_v53, 8.507059e+37 }
 0x54f   :  { %v505_v35 = vsel %vm504_vm7, %v1164_v20, %v501_v33 }
 0x550   :  { %v510_v39 = vsel %vm507_vm8, %v509_v50, %v505_v35 }
 0x551   :  { %v529_v40 = vmul.f32 %v1166_v36, %v510_v39  ;;  %v1170_v37 = vpop.eup %1169  ;;  %v528_v44 = vmul.f32 %v510_v39, %v1593_v55 }
 0x552   :  { %v513_v42 = vmul.f32 %v1170_v37, %v496_v41  ;;  %vm518_vm9 = vweird.f32 %v1170_v37 }
 0x553   :  { %531 = vrot.lane.b32.xlu2 %v529_v40, %s1260_s0  ;;  %vm519_vm11 = vmor %vm517_vm10, %vm518_vm9 }
 0x554   :  { %v514_v43 = vsub.f32 1.0, %v513_v42 }
 0x556   :  { %v515_v46 = vmul.f32 %v1170_v37, %v514_v43 }
 0x558   :  { %v516_v48 = vadd.f32 %v1170_v37, %v515_v46 }
 0x55a   :  { %v520_v54 = vsel %vm519_vm11, %v1170_v37, %v516_v48 }
 0x55b   :  { %v525_v62 = vsel %vm522_vm12, %v524_v56, %v520_v54 }
 0x5ad   :  { %v532_v38 = vpop.permute.xlu2 %531 }
 0x5ae   :  { %v1611_v45 = vadd.f32 %v532_v38, %v528_v44 }
 0x5b0   :  { %1171 = vtanh.f32 %v1611_v45 }
 0x5b6   :  { %v1172_v57 = vpop.eup %1171 }
 0x5b7   :  { %v536_v63 = vmul.f32 %v1172_v57, %v525_v62 }
 0x5b9   :  { %v537_v4 = vpack.c.bf16 %v536_v63, %v536_v63 }
 0x5bb   :  { %539 = vrot.lane.b32.xlu0 %v537_v4, %s1260_s0 }
 0x62d   :  { %v540_v55 = vpop.permute.xlu0 %539 }
 0x62e   :  { %1079 = vmatmul.msk.bf16.vlgmr.msra.gmra.mxu0 %vm51_vm0, %v540_v55  ;;  %1080 = vmatmul.msk.bf16.vlgmr.msra.gmra.mxu1 %vm51_vm0, %v540_v55 }
 0x62f   :  { %904 = vmatpush.bf16.msra.mxu0 %v1459_v17  ;;  %917 = vmatpush.bf16.msra.mxu1 %v1470_v24 }
 0x633   :  { %905 = vmatpush.bf16.msra.mxu0 %v1482_v30  ;;  %918 = vmatpush.bf16.msra.mxu1 %v1486_v32 }
 0x637   :  { %906 = vmatpush.bf16.msra.mxu0 %v1504_v47  ;;  %919 = vmatpush.bf16.msra.mxu1 %v1512_v49 }
 0x63b   :  { %907 = vmatpush.bf16.msra.mxu0 %v1531_v60  ;;  %920 = vmatpush.bf16.msra.mxu1 %v1535_v61 }
 0x6ab   :  { %v561_v7 = vpop.f32.mrf.mxu0  ;;  %v574_v0 = vpop.f32.mrf.mxu1 }
 0x6ac   :  { %v562_v31 = vadd.f32 %v561_v7, %v1405_v1  ;;  %v575_v47 = vadd.f32 %v574_v0, %v1408_v2 }
 0x6ae   :  { %v1081_v8 = vmul.f32 -1.442695, %v562_v31  ;;  %v1082_v18 = vmul.f32 -1.442695, %v575_v47 }
 0x6b0   :  { %1173 = vpow2.f32 %v1081_v8 }
 0x6b3   :  { %v563_v17 = vpop.f32.mrf.mxu0  ;;  %v576_v24 = vpop.f32.mrf.mxu1 }
 0x6b6   :  { %v1174_v58 = vpop.eup %1173 }
 0x6b7   :  { %v584_v30 = vadd.f32 1.0, %v1174_v58 }
 0x6b9   :  { %1175 = vrcp.f32 %v584_v30  ;;  %v597_v60 = vand.u32 2147483648, %v584_v30  ;;  %v595_v61 = vand.u32 2147483647, %v584_v30  ;;  %vm591_vm14 = vweird.f32 %v584_v30 }
 0x6ba   :  { %1177 = vtanh.f32 %v575_v47 }
 0x6bb   :  { %v598_v1 = vor.u32 1.1754944e-38, %v597_v60  ;;  %vm596_vm2 = vcmp.eq.f32.partialorder %v595_v61, 8.507059e+37  ;;  %1179 = vpow2.f32 %v1082_v18 }
 0x6bf   :  { %v1176_v32 = vpop.eup %1175 }
 0x6c0   :  { %v587_v25 = vmul.f32 %v1176_v32, %v584_v30  ;;  %vm592_vm13 = vweird.f32 %v1176_v32  ;;  %v1178_v13 = vpop.eup %1177 }
 0x6c1   :  { %vm593_vm15 = vmor %vm591_vm14, %vm592_vm13  ;;  %v1180_v2 = vpop.eup %1179 }
 0x6c2   :  { %v588_v49 = vsub.f32 1.0, %v587_v25  ;;  %v585_v20 = vadd.f32 1.0, %v1180_v2 }
 0x6c4   :  { %v589_v11 = vmul.f32 %v1176_v32, %v588_v49  ;;  %1181 = vrcp.f32 %v585_v20  ;;  %v612_v35 = vand.u32 2147483648, %v585_v20  ;;  %vm606_vm4 = vweird.f32 %v585_v20 }
 0x6c5   :  { %v610_v36 = vand.u32 2147483647, %v585_v20 }
 0x6c6   :  { %v590_v12 = vadd.f32 %v1176_v32, %v589_v11  ;;  %v613_v40 = vor.u32 1.1754944e-38, %v612_v35 }
 0x6c7   :  { %vm611_vm5 = vcmp.eq.f32.partialorder %v610_v36, 8.507059e+37 }
 0x6c8   :  { %v594_v51 = vsel %vm593_vm15, %v1176_v32, %v590_v12 }
 0x6c9   :  { %v599_v14 = vsel %vm596_vm2, %v598_v1, %v594_v51 }
 0x6ca   :  { %v618_v15 = vmul.f32 %v1178_v13, %v599_v14  ;;  %v1182_v21 = vpop.eup %1181  ;;  %v617_v28 = vmul.f32 %v599_v14, %v1611_v45 }
 0x6cb   :  { %v602_v22 = vmul.f32 %v1182_v21, %v585_v20  ;;  %vm607_vm3 = vweird.f32 %v1182_v21 }
 0x6cc   :  { %620 = vrot.lane.b32.xlu1 %v618_v15, %s1260_s0  ;;  %vm608_vm1 = vmor %vm606_vm4, %vm607_vm3 }
 0x6cd   :  { %v603_v26 = vsub.f32 1.0, %v602_v22 }
 0x6cf   :  { %v604_v27 = vmul.f32 %v1182_v21, %v603_v26 }
 0x6d1   :  { %v605_v50 = vadd.f32 %v1182_v21, %v604_v27 }
 0x6d3   :  { %v609_v39 = vsel %vm608_vm1, %v1182_v21, %v605_v50 }
 0x6d4   :  { %v614_v59 = vsel %vm611_vm5, %v613_v40, %v609_v39 }
 0x73e   :  { %v621_v29 = vpop.permute.xlu1 %620 }
 0x73f   :  { %v623_v33 = vadd.f32 %v621_v29, %v617_v28 }
 0x741   :  { %1183 = vtanh.f32 %v623_v33 }
 0x747   :  { %v1184_v34 = vpop.eup %1183 }
 0x748   :  { %v625_v41 = vmul.f32 %v1184_v34, %v614_v59 }
 0x74a   :  { %v626_v37 = vpack.c.bf16 %v625_v41, %v625_v41 }
 0x74c   :  { %628 = vrot.lane.b32.xlu2 %v626_v37, %s1260_s0 }
 0x7a6   :  { %v629_v42 = vpop.permute.xlu2 %628 }
 0x7a7   :  { %1083 = vmatmul.msk.bf16.vlgmr.msra.gmra.mxu2 %vm51_vm0, %v629_v42  ;;  %1084 = vmatmul.msk.bf16.vlgmr.msra.gmra.mxu3 %vm51_vm0, %v629_v42 }
 0x82a   :  { %v650_v43 = vpop.f32.mrf.mxu2  ;;  %v663_v46 = vpop.f32.mrf.mxu3 }
 0x82b   :  { %v651_v44 = vadd.f32 %v650_v43, %v1411_v3  ;;  %v664_v56 = vadd.f32 %v663_v46, %v1415_v5 }
 0x82d   :  { %v1085_v38 = vmul.f32 -1.442695, %v651_v44  ;;  %v1086_v24 = vmul.f32 -1.442695, %v664_v56 }
 0x82f   :  { %1185 = vpow2.f32 %v1085_v38 }
 0x832   :  { %v652_v45 = vpop.f32.mrf.mxu2  ;;  %v665_v48 = vpop.f32.mrf.mxu3 }
 0x835   :  { %v1186_v52 = vpop.eup %1185 }
 0x836   :  { %v673_v53 = vadd.f32 1.0, %v1186_v52 }
 0x838   :  { %1187 = vrcp.f32 %v673_v53  ;;  %v686_v63 = vand.u32 2147483648, %v673_v53  ;;  %v684_v55 = vand.u32 2147483647, %v673_v53  ;;  %vm680_vm7 = vweird.f32 %v673_v53 }
 0x839   :  { %1189 = vtanh.f32 %v664_v56 }
 0x83a   :  { %v687_v3 = vor.u32 1.1754944e-38, %v686_v63  ;;  %vm685_vm9 = vcmp.eq.f32.partialorder %v684_v55, 8.507059e+37  ;;  %1191 = vpow2.f32 %v1086_v24 }
 0x83e   :  { %v1188_v54 = vpop.eup %1187 }
 0x83f   :  { %v676_v57 = vmul.f32 %v1188_v54, %v673_v53  ;;  %vm681_vm6 = vweird.f32 %v1188_v54  ;;  %v1190_v31 = vpop.eup %1189 }
 0x840   :  { %vm682_vm8 = vmor %vm680_vm7, %vm681_vm6  ;;  %v1192_v5 = vpop.eup %1191 }
 0x841   :  { %v677_v62 = vsub.f32 1.0, %v676_v57  ;;  %v674_v58 = vadd.f32 1.0, %v1192_v5 }
 0x843   :  { %v678_v4 = vmul.f32 %v1188_v54, %v677_v62  ;;  %1193 = vrcp.f32 %v674_v58  ;;  %v701_v12 = vand.u32 2147483648, %v674_v58  ;;  %vm695_vm11 = vweird.f32 %v674_v58 }
 0x844   :  { %v699_v1 = vand.u32 2147483647, %v674_v58 }
 0x845   :  { %v679_v7 = vadd.f32 %v1188_v54, %v678_v4  ;;  %v702_v13 = vor.u32 1.1754944e-38, %v701_v12 }
 0x846   :  { %vm700_vm13 = vcmp.eq.f32.partialorder %v699_v1, 8.507059e+37 }
 0x847   :  { %v683_v0 = vsel %vm682_vm8, %v1188_v54, %v679_v7 }
 0x848   :  { %v688_v8 = vsel %vm685_vm9, %v687_v3, %v683_v0 }
 0x849   :  { %v707_v17 = vmul.f32 %v1190_v31, %v688_v8  ;;  %v1194_v30 = vpop.eup %1193  ;;  %v706_v49 = vmul.f32 %v688_v8, %v623_v33 }
 0x84a   :  { %v691_v32 = vmul.f32 %v1194_v30, %v674_v58  ;;  %vm696_vm10 = vweird.f32 %v1194_v30 }
 0x84b   :  { %709 = vrot.lane.b32.xlu0 %v707_v17, %s1260_s0  ;;  %vm697_vm12 = vmor %vm695_vm11, %vm696_vm10 }
 0x84c   :  { %v692_v47 = vsub.f32 1.0, %v691_v32 }
 0x84e   :  { %v693_v25 = vmul.f32 %v1194_v30, %v692_v47 }
 0x850   :  { %v694_v61 = vadd.f32 %v1194_v30, %v693_v25 }
 0x852   :  { %v698_v51 = vsel %vm697_vm12, %v1194_v30, %v694_v61 }
 0x853   :  { %v703_v15 = vsel %vm700_vm13, %v702_v13, %v698_v51 }
 0x8bd   :  { %v710_v60 = vpop.permute.xlu0 %709 }
 0x8be   :  { %v712_v11 = vadd.f32 %v710_v60, %v706_v49 }
 0x8c0   :  { %1195 = vtanh.f32 %v712_v11 }
 0x8c6   :  { %v1196_v14 = vpop.eup %1195 }
 0x8c7   :  { %v714_v18 = vmul.f32 %v1196_v14, %v703_v15 }
 0x8c9   :  { %v715_v2 = vpack.c.bf16 %v714_v18, %v714_v18 }
 0x8cb   :  { %717 = vrot.lane.b32.xlu1 %v715_v2, %s1260_s0 }
 0x93d   :  { %v718_v20 = vpop.permute.xlu1 %717 }
 0x93e   :  { %1087 = vmatmul.msk.bf16.vlgmr.msrb.gmra.mxu0 %vm51_vm0, %v718_v20  ;;  %1088 = vmatmul.msk.bf16.vlgmr.msrb.gmra.mxu1 %vm51_vm0, %v718_v20 }
 0x9bb   :  { %v739_v21 = vpop.f32.mrf.mxu0  ;;  %v752_v22 = vpop.f32.mrf.mxu1 }
 0x9bc   :  { %v740_v26 = vadd.f32 %v739_v21, %v1418_v6  ;;  %v753_v36 = vadd.f32 %v752_v22, %v1421_v9 }
 0x9be   :  { %v1089_v27 = vmul.f32 -1.442695, %v740_v26  ;;  %v1090_v38 = vmul.f32 -1.442695, %v753_v36 }
 0x9c0   :  { %1197 = vpow2.f32 %v1089_v27 }
 0x9c3   :  { %v741_v28 = vpop.f32.mrf.mxu0  ;;  %v754_v29 = vpop.f32.mrf.mxu1 }
 0x9c6   :  { %v1198_v33 = vpop.eup %1197 }
 0x9c7   :  { %v762_v50 = vadd.f32 1.0, %v1198_v33 }
 0x9c9   :  { %1199 = vrcp.f32 %v762_v50  ;;  %v775_v34 = vand.u32 2147483648, %v762_v50  ;;  %v773_v41 = vand.u32 2147483647, %v762_v50  ;;  %vm769_vm15 = vweird.f32 %v762_v50 }
 0x9ca   :  { %1201 = vtanh.f32 %v753_v36 }
 0x9cb   :  { %v776_v6 = vor.u32 1.1754944e-38, %v775_v34  ;;  %vm774_vm3 = vcmp.eq.f32.partialorder %v773_v41, 8.507059e+37  ;;  %1203 = vpow2.f32 %v1090_v38 }
 0x9cf   :  { %v1200_v35 = vpop.eup %1199 }
 0x9d0   :  { %v765_v39 = vmul.f32 %v1200_v35, %v762_v50  ;;  %vm770_vm14 = vweird.f32 %v1200_v35  ;;  %v1202_v43 = vpop.eup %1201 }
 0x9d1   :  { %vm771_vm2 = vmor %vm769_vm15, %vm770_vm14  ;;  %v1204_v9 = vpop.eup %1203 }
 0x9d2   :  { %v766_v40 = vsub.f32 1.0, %v765_v39  ;;  %v763_v45 = vadd.f32 1.0, %v1204_v9 }
 0x9d4   :  { %v767_v59 = vmul.f32 %v1200_v35, %v766_v40  ;;  %1205 = vrcp.f32 %v763_v45  ;;  %v790_v4 = vand.u32 2147483648, %v763_v45  ;;  %vm784_vm1 = vweird.f32 %v763_v45 }
 0x9d5   :  { %v788_v55 = vand.u32 2147483647, %v763_v45 }
 0x9d6   :  { %v768_v37 = vadd.f32 %v1200_v35, %v767_v59  ;;  %v791_v3 = vor.u32 1.1754944e-38, %v790_v4 }
 0x9d7   :  { %vm789_vm6 = vcmp.eq.f32.partialorder %v788_v55, 8.507059e+37 }
 0x9d8   :  { %v772_v42 = vsel %vm771_vm2, %v1200_v35, %v768_v37 }
 0x9d9   :  { %v777_v46 = vsel %vm774_vm3, %v776_v6, %v772_v42 }
 0x9da   :  { %v796_v44 = vmul.f32 %v1202_v43, %v777_v46  ;;  %v1206_v48 = vpop.eup %1205  ;;  %v795_v56 = vmul.f32 %v777_v46, %v712_v11 }
 0x9db   :  { %v780_v52 = vmul.f32 %v1206_v48, %v763_v45  ;;  %vm785_vm4 = vweird.f32 %v1206_v48 }
 0x9dc   :  { %798 = vrot.lane.b32.xlu2 %v796_v44, %s1260_s0  ;;  %vm786_vm5 = vmor %vm784_vm1, %vm785_vm4 }
 0x9dd   :  { %v781_v53 = vsub.f32 1.0, %v780_v52 }
 0x9df   :  { %v782_v54 = vmul.f32 %v1206_v48, %v781_v53 }
 0x9e1   :  { %v783_v63 = vadd.f32 %v1206_v48, %v782_v54 }
 0x9e3   :  { %v787_v7 = vsel %vm786_vm5, %v1206_v48, %v783_v63 }
 0x9e4   :  { %v792_v31 = vsel %vm789_vm6, %v791_v3, %v787_v7 }
 0xa36   :  { %v799_v57 = vpop.permute.xlu2 %798 }
 0xa37   :  { %v801_v62 = vadd.f32 %v799_v57, %v795_v56 }
 0xa39   :  { %1207 = vtanh.f32 %v801_v62 }
 0xa3f   :  { %v1208_v0 = vpop.eup %1207 }
 0xa40   :  { %v803_v8 = vmul.f32 %v1208_v0, %v792_v31 }
 0xa42   :  { %v804_v17 = vpack.c.bf16 %v803_v8, %v803_v8 }
 0xa44   :  { %806 = vrot.lane.b32.xlu0 %v804_v17, %s1260_s0 }
 0xab6   :  { %v807_v24 = vpop.permute.xlu0 %806 }
 0xab7   :  { %1091 = vmatmul.msk.bf16.vlgmr.msrb.gmra.mxu2 %vm51_vm0, %v807_v24  ;;  %1092 = vmatmul.msk.bf16.vlgmr.msrb.gmra.mxu3 %vm51_vm0, %v807_v24 }
 0xb3a   :  { %v828_v5 = vpop.f32.mrf.mxu2  ;;  %v841_v58 = vpop.f32.mrf.mxu3 }
 0xb3b   :  { %v829_v30 = vadd.f32 %v828_v5, %v1424_v10  ;;  %v842_v61 = vadd.f32 %v841_v58, %v1429_v16  ;;  %v977_v58 = vld [vmem:[%s1679_s4 + $0x18] sm:$0xff] }
 0xb3c   :  { %1000 = vmatpush.msra.mxu2 %v977_v58 }
 0xb3d   :  { %v1093_v32 = vmul.f32 -1.442695, %v829_v30  ;;  %v1094_v22 = vmul.f32 -1.442695, %v842_v61  ;;  %v976_v30 = vld [vmem:[%s1679_s4 + $0x10] sm:$0xff] }
 0xb3e   :  { %1001 = vmatpush.msra.mxu2 %v976_v30 }
 0xb3f   :  { %1209 = vpow2.f32 %v1093_v32  ;;  %v975_v32 = vld [vmem:[%s1679_s4 + $0x8] sm:$0xff] }
 0xb40   :  { %1002 = vmatpush.msra.mxu2 %v975_v32 }
 0xb42   :  { %v830_v47 = vpop.f32.mrf.mxu2  ;;  %v843_v25 = vpop.f32.mrf.mxu3 }
 0xb43   :  { %v974_v47 = vld [vmem:[%s1679_s4] sm:$0xff]  ;;  %s1261_s4 = smov 32  }
 0xb44   :  { %1003 = vmatpush.msra.mxu2 %v974_v47 }
 0xb45   :  { %v1210_v49 = vpop.eup %1209 }
 0xb46   :  { %v851_v60 = vadd.f32 1.0, %v1210_v49 }
 0xb48   :  { %1211 = vrcp.f32 %v851_v60  ;;  %v864_v51 = vand.u32 2147483648, %v851_v60  ;;  %v862_v14 = vand.u32 2147483647, %v851_v60  ;;  %vm858_vm8 = vweird.f32 %v851_v60 }
 0xb49   :  { %1213 = vtanh.f32 %v842_v61 }
 0xb4a   :  { %v865_v10 = vor.u32 1.1754944e-38, %v864_v51  ;;  %vm863_vm10 = vcmp.eq.f32.partialorder %v862_v14, 8.507059e+37  ;;  %1215 = vpow2.f32 %v1094_v22  ;;  %v1112_v22 = vld [vmem:[%s1680_s5] ss:$0 sm:$0xff] }
 0xb4e   :  { %v1212_v11 = vpop.eup %1211 }
 0xb4f   :  { %v854_v12 = vmul.f32 %v1212_v11, %v851_v60  ;;  %vm859_vm7 = vweird.f32 %v1212_v11  ;;  %v1214_v2 = vpop.eup %1213 }
 0xb50   :  { %vm860_vm9 = vmor %vm858_vm8, %vm859_vm7  ;;  %v1216_v16 = vpop.eup %1215  ;;  %vm985_vm7 = vcmask 261120   ;;  %vm1008_vm8 = vcmask 41984  }
 0xb51   :  { %v855_v1 = vsub.f32 1.0, %v854_v12  ;;  %v852_v26 = vadd.f32 1.0, %v1216_v16 }
 0xb53   :  { %v856_v13 = vmul.f32 %v1212_v11, %v855_v1  ;;  %1217 = vrcp.f32 %v852_v26  ;;  %v879_v40 = vand.u32 2147483648, %v852_v26  ;;  %vm873_vm12 = vweird.f32 %v852_v26 }
 0xb54   :  { %v877_v34 = vand.u32 2147483647, %v852_v26 }
 0xb55   :  { %v857_v15 = vadd.f32 %v1212_v11, %v856_v13  ;;  %v880_v41 = vor.u32 1.1754944e-38, %v879_v40 }
 0xb56   :  { %vm878_vm14 = vcmp.eq.f32.partialorder %v877_v34, 8.507059e+37 }
 0xb57   :  { %v861_v18 = vsel %vm860_vm9, %v1212_v11, %v857_v15 }
 0xb58   :  { %v866_v20 = vsel %vm863_vm10, %v865_v10, %v861_v18 }
 0xb59   :  { %v885_v21 = vmul.f32 %v1214_v2, %v866_v20  ;;  %v1218_v27 = vpop.eup %1217  ;;  %v884_v50 = vmul.f32 %v866_v20, %v801_v62 }
 0xb5a   :  { %v869_v28 = vmul.f32 %v1218_v27, %v852_v26  ;;  %vm874_vm11 = vweird.f32 %v1218_v27 }
 0xb5b   :  { %887 = vrot.lane.b32.xlu1 %v885_v21, %s1260_s0  ;;  %vm875_vm13 = vmor %vm873_vm12, %vm874_vm11 }
 0xb5c   :  { %v870_v29 = vsub.f32 1.0, %v869_v28 }
 0xb5e   :  { %v871_v33 = vmul.f32 %v1218_v27, %v870_v29 }
 0xb60   :  { %v872_v39 = vadd.f32 %v1218_v27, %v871_v33 }
 0xb62   :  { %v876_v59 = vsel %vm875_vm13, %v1218_v27, %v872_v39 }
 0xb63   :  { %v881_v6 = vsel %vm878_vm14, %v880_v41, %v876_v59 }
 0xbcd   :  { %v888_v35 = vpop.permute.xlu1 %887 }
 0xbce   :  { %v1647_v36 = vadd.f32 %v888_v35, %v884_v50 }
 0xbd0   :  { %1219 = vtanh.f32 %v1647_v36 }
 0xbd6   :  { %v1220_v37 = vpop.eup %1219 }
 0xbd7   :  { %v892_v42 = vmul.f32 %v1220_v37, %v881_v6 }
 0xbd9   :  { %v893_v43 = vpack.c.bf16 %v892_v42, %v892_v42 }
 0xbdb   :  { %895 = vrot.lane.b32.xlu2 %v893_v43, %s1260_s0 }
 0xc35   :  { %v896_v46 = vpop.permute.xlu2 %895 }
 0xc36   :  { %1095 = vmatmul.msk.bf16.vlgmr.msra.gmra.mxu0 %vm51_vm0, %v896_v46  ;;  %1096 = vmatmul.msk.bf16.vlgmr.msra.gmra.mxu1 %vm51_vm0, %v896_v46 }
 0xcb3   :  { %v909_v44 = vpop.f32.mrf.mxu0  ;;  %v922_v38 = vpop.f32.mrf.mxu1 }
 0xcb4   :  { %v910_v9 = vadd.f32 %v909_v44, %v1359_v19  ;;  %v923_v57 = vadd.f32 %v922_v38, %v1362_v23 }
 0xcb6   :  { %v1097_v45 = vmul.f32 -1.442695, %v910_v9  ;;  %v1098_v24 = vmul.f32 -1.442695, %v923_v57 }
 0xcb8   :  { %1221 = vpow2.f32 %v1097_v45 }
 0xcbb   :  { %v911_v48 = vpop.f32.mrf.mxu0  ;;  %v924_v52 = vpop.f32.mrf.mxu1 }
 0xcbe   :  { %v1222_v53 = vpop.eup %1221 }
 0xcbf   :  { %v932_v54 = vadd.f32 1.0, %v1222_v53 }
 0xcc1   :  { %1223 = vrcp.f32 %v932_v54  ;;  %v945_v4 = vand.u32 2147483648, %v932_v54  ;;  %v943_v7 = vand.u32 2147483647, %v932_v54  ;;  %vm939_vm15 = vweird.f32 %v932_v54 }
 0xcc2   :  { %1225 = vtanh.f32 %v923_v57 }
 0xcc3   :  { %v946_v19 = vor.u32 1.1754944e-38, %v945_v4  ;;  %vm944_vm3 = vcmp.eq.f32.partialorder %v943_v7, 8.507059e+37  ;;  %1227 = vpow2.f32 %v1098_v24 }
 0xcc7   :  { %v1224_v56 = vpop.eup %1223 }
 0xcc8   :  { %v935_v62 = vmul.f32 %v1224_v56, %v932_v54  ;;  %vm940_vm0 = vweird.f32 %v1224_v56  ;;  %v1226_v31 = vpop.eup %1225 }
 0xcc9   :  { %vm941_vm2 = vmor %vm939_vm15, %vm940_vm0  ;;  %v1228_v23 = vpop.eup %1227 }
 0xcca   :  { %v936_v63 = vsub.f32 1.0, %v935_v62  ;;  %v933_v5 = vadd.f32 1.0, %v1228_v23 }
 0xccc   :  { %v937_v55 = vmul.f32 %v1224_v56, %v936_v63  ;;  %1229 = vrcp.f32 %v933_v5  ;;  %v960_v13 = vand.u32 2147483648, %v933_v5  ;;  %vm954_vm1 = vweird.f32 %v933_v5 }
 0xccd   :  { %v958_v14 = vand.u32 2147483647, %v933_v5 }
 0xcce   :  { %v938_v3 = vadd.f32 %v1224_v56, %v937_v55  ;;  %v961_v10 = vor.u32 1.1754944e-38, %v960_v13 }
 0xccf   :  { %vm959_vm6 = vcmp.eq.f32.partialorder %v958_v14, 8.507059e+37 }
 0xcd0   :  { %v942_v0 = vsel %vm941_vm2, %v1224_v56, %v938_v3 }
 0xcd1   :  { %v947_v8 = vsel %vm944_vm3, %v946_v19, %v942_v0 }
 0xcd2   :  { %v966_v17 = vmul.f32 %v1226_v31, %v947_v8  ;;  %v1230_v25 = vpop.eup %1229  ;;  %v965_v61 = vmul.f32 %v947_v8, %v1647_v36 }
 0xcd3   :  { %v950_v49 = vmul.f32 %v1230_v25, %v933_v5  ;;  %vm955_vm4 = vweird.f32 %v1230_v25 }
 0xcd4   :  { %968 = vrot.lane.b32.xlu0 %v966_v17, %s1260_s0  ;;  %vm956_vm5 = vmor %vm954_vm1, %vm955_vm4 }
 0xcd5   :  { %v951_v60 = vsub.f32 1.0, %v950_v49 }
 0xcd7   :  { %v952_v11 = vmul.f32 %v1230_v25, %v951_v60 }
 0xcd9   :  { %v953_v51 = vadd.f32 %v1230_v25, %v952_v11 }
 0xcdb   :  { %v957_v15 = vsel %vm956_vm5, %v1230_v25, %v953_v51 }
 0xcdc   :  { %v962_v2 = vsel %vm959_vm6, %v961_v10, %v957_v15 }
 0xd46   :  { %v969_v12 = vpop.permute.xlu0 %968 }
 0xd47   :  { %v971_v1 = vadd.f32 %v969_v12, %v965_v61 }
 0xd49   :  { %1231 = vtanh.f32 %v971_v1 }
 0xd4f   :  { %v1232_v18 = vpop.eup %1231 }
 0xd50   :  { %v973_v20 = vmul.f32 %v1232_v18, %v962_v2 }
 0xd52   :  { %983 = vrot.lane.b32.xlu1 %v973_v20, %s1261_s4 }
 0xdc4   :  { %v984_v21 = vpop.permute.xlu1 %983 }
 0xdc5   :  { %1099 = vmatmul.msk.f32.vlgmr.msra.gmra.mxu2 %vm985_vm7, %v984_v21 }
 0xe48   :  { %v1005_v16 = vpop.f32.mrf.mxu2 }
 0xe49   :  { %v1006_v26 = vadd.f32 %v1112_v22, %v1005_v16 }
 0xe4b   :  { %1009 = vst.msk [vmem:[#allocation2] sm:$0x3] %vm1008_vm8, %v1006_v26 }
 0xe4c   :  { %1020 = dma.vmem_to_hbm [thread:$0]  %s1016_s24, 32, %s1018_s27, [#allocation3]  }
 0xe4d   :  { %1257 = dma.done.wait [#allocation3], 32  }
 0xe4e   :  { %1258 = vsyncadd [#allocation3], 4294967264 }
 0xe4f   :  { %1025 = vsyncpa [#allocation3], 1 }

</bundles_post_ra>
